<compile_context>
chip_gen: v7x
topology: tpu7x:2x2x1
jax: 0.10.0
libtpu: 0.0.40
codegen_flags: <defaults>
</compile_context>

<pallas_src>
import functools

import jax
import jax.numpy as jnp
import numpy as np
from jax import lax
from jax.experimental import pallas as pl
from jax.experimental.pallas import tpu as pltpu

# ----------------------------- configuration --------------------------------
NT = 16      # args.NT  (nonterminals)
T = 32       # args.T   (preterminals)
S_DIM = 64   # args.s_dim
V = 256      # vocab size
B = 2        # batch
N = 8        # sequence length

VMEM = pl.BlockSpec(memory_space=pltpu.MemorySpace.VMEM)


def _slab_layout(bn):
    """Lane-dense packing of all outputs into one f32 slab.

    rows 0:NT , cols 0:2(NT+T)            : [left | right] probs (parents on rows)
    rows 0:T  , cols 2(NT+T):2(NT+T)+bn   : unary^T  (T, bn)
    row  r_top, cols 0:NT                 : root log-probs
    Unwritten regions are garbage (never read by the wrapper).
    """
    r_top = max(NT, T)
    slab_w = ((max(2 * (NT + T) + bn, NT) + 127) // 128) * 128
    slab_h = r_top + 8
    return r_top, slab_w, slab_h


# ------------------------------- fused kernel --------------------------------
def _fused_kernel(x_ref, rse_ref, ws_ref, bs_ref, tw_ref, tb_ref, voc_ref,
                  root_ref, out_ref, *, bn, r_top):
    f32, bf16 = jnp.float32, jnp.bfloat16

    rse = rse_ref[...]                                  # (NT+T, S) f32
    nonterm = rse[:NT]                                  # (NT, S)
    term_emb = rse[NT:]                                 # (T, S)

    # ---- one wide MXU pass for every first-layer projection ----------------
    # ws = [left_w | right_w | term_w0 | parent_w]  (S, 4S) bf16 (pre-stacked)
    big = jnp.dot(rse.astype(bf16), ws_ref[...],
                  preferred_element_type=f32) + bs_ref[...]       # (48, 4S) f32

    lr = jax.nn.relu(big[:, :2 * S_DIM])                          # (48, 2S)
    lfeat = lr[:, :S_DIM] + rse                                   # (48, S)
    rfeat = lr[:, S_DIM:] + rse                                   # (48, S)
    h = big[NT:, 2 * S_DIM:3 * S_DIM]                             # (T, S) term layer-0 (no relu)
    parent1 = jax.nn.relu(big[:NT, 3 * S_DIM:]) + nonterm         # (NT, S)

    # ---- term MLP: 3 ResLayers, bf16 operands / f32 accumulate+residual ----
    for i in range(3):
        t = jax.nn.relu(jnp.dot(h.astype(bf16), tw_ref[2 * i],
                                preferred_element_type=f32) + tb_ref[2 * i])
        t = jax.nn.relu(jnp.dot(t.astype(bf16), tw_ref[2 * i + 1],
                                preferred_element_type=f32) + tb_ref[2 * i + 1])
        h = h + t
    feat = h + term_emb                                           # (T, S) f32

    logits = jnp.dot(feat.astype(bf16), voc_ref[...],
                     preferred_element_type=f32)                  # (T, V) f32

    # ---- unary (transposed): one-hot gather + f32 logsumexp ----------------
    # (the (T,V) log_softmax table is never materialized; lse stays f32 so no
    #  ~|log V| magnitude value passes through bf16)
    m = jnp.max(logits, axis=-1, keepdims=True)                   # (T, 1)
    lse = m + jnp.log(jnp.sum(jnp.exp(logits - m), axis=-1, keepdims=True))
    lane_v = lax.broadcasted_iota(jnp.int32, (bn, V), 1)
    onehot = (lane_v == x_ref[...]).astype(bf16)                  # (bn, V), exact in bf16
    gathered = lax.dot_general(logits.astype(bf16), onehot,
                               (((1,), (1,)), ((), ())),
                               preferred_element_type=f32)        # (T, bn)
    unary_t = gathered - lse                                      # (T, bn)

    # ---- rules + root folded into one MXU pass ------------------------------
    child = jnp.concatenate([lfeat, rfeat, nonterm], axis=0)      # (2(NT+T)+NT, S)
    parents = jnp.concatenate([parent1, root_ref[...]], axis=0)   # (NT+1, S)
    scores = lax.dot_general(parents.astype(bf16), child.astype(bf16),
                             (((1,), (1,)), ((), ())),
                             preferred_element_type=f32)          # (NT+1, 2(NT+T)+NT)

    # segmented left/right softmax over lanes, kept in the (NT, 96) layout
    rs = scores[:NT, :2 * (NT + T)]                               # (NT, 96)
    seg = lax.broadcasted_iota(jnp.int32, (NT, 2 * (NT + T)), 1) >= (NT + T)
    m_l = jnp.max(jnp.where(seg, -jnp.inf, rs), axis=-1, keepdims=True)
    m_r = jnp.max(jnp.where(seg, rs, -jnp.inf), axis=-1, keepdims=True)
    e = jnp.exp(rs - jnp.where(seg, m_r, m_l))
    s_l = jnp.sum(jnp.where(seg, 0.0, e), axis=-1, keepdims=True)
    s_r = jnp.sum(jnp.where(seg, e, 0.0), axis=-1, keepdims=True)
    probs = e * jnp.where(seg, 1.0 / s_r, 1.0 / s_l)              # (NT, 96)

    root_logits = scores[NT:NT + 1, 2 * (NT + T):2 * (NT + T) + NT]   # (1, NT)
    root_logp = jax.nn.log_softmax(root_logits, axis=-1)

    # ---- three partial stores; no slab zero-init ----------------------------
    out_ref[0:NT, 0:2 * (NT + T)] = probs
    out_ref[0:T, 2 * (NT + T):2 * (NT + T) + bn] = unary_t
    out_ref[r_top:r_top + 1, 0:NT] = root_logp


# ----------------------------- pallas wrapper ---------------------------------
def _fused_pallas(x_col, rse, w_stack, b_stack, term_w_rest, term_b_rest,
                  vocab_bf16, root_emb):
    bn = int(x_col.shape[0])
    r_top, slab_w, slab_h = _slab_layout(bn)
    operands = (x_col, rse, w_stack, b_stack, term_w_rest, term_b_rest,
                vocab_bf16, root_emb)

    flops = 2 * ((NT + T) * S_DIM * 4 * S_DIM       # stacked first-layer pass
                 + 6 * T * S_DIM * S_DIM            # term ResLayers
                 + T * S_DIM * V                    # vocab logits
                 + T * V * bn                       # one-hot gather
                 + (NT + 1) * S_DIM * (2 * (NT + T) + NT))   # rules + root
    transcendentals = T * V + NT * 2 * (NT + T) + NT + T + 1
    bytes_accessed = int(sum(int(np.prod(a.shape)) * a.dtype.itemsize
                             for a in operands) + slab_h * slab_w * 4)

    return pl.pallas_call(
        functools.partial(_fused_kernel, bn=bn, r_top=r_top),
        out_shape=jax.ShapeDtypeStruct((slab_h, slab_w), jnp.float32),
        in_specs=[VMEM] * 8,
        out_specs=VMEM,
        cost_estimate=pl.CostEstimate(flops=int(flops),
                                      transcendentals=int(transcendentals),
                                      bytes_accessed=bytes_accessed),
    )(*operands)
    # NOTE: no grid / single TensorCore on purpose — total residency < 1 MiB,
    # so pipelining / v7x 64 MiB limits do not bind.  Add a blocked grid over
    # the vocab axis only if V or B*N grow by ~100x.


# ------------------------------ parameters -----------------------------------
def _xavier(key, shape):
    fan_in, fan_out = shape[-2], shape[-1]
    limit = float(np.sqrt(6.0 / (fan_in + fan_out)))
    return jax.random.uniform(key, shape, jnp.float32, -limit, limit)


def init_params(key):
    ks = jax.random.split(key, 8)
    return {
        'root_emb':       _xavier(ks[0], (1, S_DIM)),
        'vocab_emb':      _xavier(ks[1], (S_DIM, V)),
        'rule_state_emb': _xavier(ks[2], (NT + T, S_DIM)),
        # term_mlp: 1 Linear + 3 ResLayers (2 Linears each) => 7 (s,s) weights
        'term_w':  _xavier(ks[3], (7, S_DIM, S_DIM)),
        'term_b':  jnp.zeros((7, 1, S_DIM), jnp.float32),
        'left_w':  _xavier(ks[4], (S_DIM, S_DIM)),
        'left_b':  jnp.zeros((1, S_DIM), jnp.float32),
        'right_w': _xavier(ks[5], (S_DIM, S_DIM)),
        'right_b': jnp.zeros((1, S_DIM), jnp.float32),
        'parent_w': _xavier(ks[6], (S_DIM, S_DIM)),
        'parent_b': jnp.zeros((1, S_DIM), jnp.float32),
    }


def prepare_params(params):
    """One-time (per parameter update) host-side prep: stack / cast weights so
    the per-call jitted forward has zero parameter-massaging XLA ops."""
    bf16 = jnp.bfloat16
    w_stack = jnp.concatenate([params['left_w'], params['right_w'],
                               params['term_w'][0], params['parent_w']],
                              axis=1).astype(bf16)                 # (S, 4S)
    b_stack = jnp.concatenate([params['left_b'], params['right_b'],
                               params['term_b'][0], params['parent_b']],
                              axis=1)                              # (1, 4S) f32
    return {
        'rse':         params['rule_state_emb'],                   # f32 (residuals)
        'w_stack':     w_stack,
        'b_stack':     b_stack,
        'term_w_rest': params['term_w'][1:].astype(bf16),           # (6,S,S)
        'term_b_rest': params['term_b'][1:],                        # (6,1,S) f32
        'vocab':       params['vocab_emb'].astype(bf16),            # (S,V)
        'root':        params['root_emb'],                          # (1,S) f32
    }


# ------------------------------- forward --------------------------------------
@jax.jit
def simple_n_pcfg_forward(prep, words):
    """words: (b, n) int32 word ids.  Returns the same dict as the torch module."""
    b, n = words.shape
    bn = b * n
    r_top, _, _ = _slab_layout(bn)
    x_col = words.reshape(bn, 1).astype(jnp.int32)

    slab = _fused_pallas(x_col, prep['rse'], prep['w_stack'], prep['b_stack'],
                         prep['term_w_rest'], prep['term_b_rest'],
                         prep['vocab'], prep['root'])

    left = slab[:NT, :NT + T].T                                    # (NT+T, NT)
    right = slab[:NT, NT + T:2 * (NT + T)].T
    unary = slab[:T, 2 * (NT + T):2 * (NT + T) + bn].T.reshape(b, n, T)
    root = jnp.broadcast_to(slab[r_top:r_top + 1, :NT], (b, NT))

    return {'unary': unary, 'root': root,
            'left_m': left[:NT], 'right_m': right[:NT],
            'left_p': left[NT:], 'right_p': right[NT:],
            'kl': 0}
    # TODO(synk): loss()/evaluate() call SimplePCFG_Triton inside-algorithm /
    # MBR-decode routines which are separate dynamic-programming kernels, not
    # part of this forward.


# ----------------------------- pure-JAX reference -----------------------------
def _ref_forward(params, words):
    rse = params['rule_state_emb']
    b = words.shape[0]
    root = jax.nn.log_softmax(params['root_emb'] @ rse[:NT].T, axis=-1)
    root = jnp.broadcast_to(root, (b, NT))

    te = rse[NT:]
    h = te @ params['term_w'][0] + params['term_b'][0]
    for i in range(3):
        t = jax.nn.relu(h @ params['term_w'][1 + 2 * i] + params['term_b'][1 + 2 * i])
        t = jax.nn.relu(t @ params['term_w'][2 + 2 * i] + params['term_b'][2 + 2 * i])
        h = h + t
    term_prob = jax.nn.log_softmax((h + te) @ params['vocab_emb'], axis=-1)
    unary = term_prob.T[words]                                    # (b, n, T)

    nonterm = rse[:NT]
    parent1 = jax.nn.relu(nonterm @ params['parent_w'] + params['parent_b']) + nonterm
    lfeat = jax.nn.relu(rse @ params['left_w'] + params['left_b']) + rse
    rfeat = jax.nn.relu(rse @ params['right_w'] + params['right_b']) + rse
    left = jax.nn.softmax(lfeat @ parent1.T, axis=0)
    right = jax.nn.softmax(rfeat @ parent1.T, axis=0)
    return {'unary': unary, 'root': root,
            'left_m': left[:NT], 'right_m': right[:NT],
            'left_p': left[NT:], 'right_p': right[NT:], 'kl': 0}


# --------------------------------- main ---------------------------------------
if __name__ == "__main__":
    key = jax.random.PRNGKey(0)
    pkey, wkey = jax.random.split(key)
    params = init_params(pkey)
    prep = prepare_params(params)
    words = jax.random.randint(wkey, (B, N), 0, V, dtype=jnp.int32)

    out = simple_n_pcfg_forward(prep, words)
    out = jax.block_until_ready(out)

    ref = _ref_forward(params, words)
    # bf16 MXU operands everywhere (f32 accumulation); logsumexp / softmax /
    # residual adds stay f32 -> slightly looser tolerance than a pure-f32 run.
    for k in ('unary', 'root', 'left_m', 'right_m', 'left_p', 'right_p'):
        np.testing.assert_allclose(np.asarray(out[k]), np.asarray(ref[k]),
                                   rtol=2e-3, atol=4e-3)

    assert out['unary'].shape == (B, N, T)
    assert out['root'].shape == (B, NT)
    assert out['left_m'].shape == (NT, NT) and out['left_p'].shape == (T, NT)
    assert out['right_m'].shape == (NT, NT) and out['right_p'].shape == (T, NT)

    print("KERNEL_OK")
</pallas_src>

<mosaic_0001>
module attributes {stable_mosaic.version = 11 : i64} {
  func.func @_fused_kernel(%arg0: memref<16x1xi32, #tpu.memory_space<vmem>>, %arg1: memref<48x64xf32, #tpu.memory_space<vmem>>, %arg2: memref<64x256xbf16, #tpu.memory_space<vmem>>, %arg3: memref<1x256xf32, #tpu.memory_space<vmem>>, %arg4: memref<6x64x64xbf16, #tpu.memory_space<vmem>>, %arg5: memref<6x1x64xf32, #tpu.memory_space<vmem>>, %arg6: memref<64x256xbf16, #tpu.memory_space<vmem>>, %arg7: memref<1x64xf32, #tpu.memory_space<vmem>>, %arg8: memref<40x128xf32, #tpu.memory_space<vmem>>) attributes {dimension_semantics = [], scalar_prefetch = 0 : i64, scratch_operands = 0 : i64, tpu.core_type = #tpu.core_type<tc>} {
    %c0 = arith.constant 0 : index
    %c0_0 = arith.constant 0 : index
    %0 = vector.load %arg1[%c0, %c0_0] : memref<48x64xf32, #tpu.memory_space<vmem>>, vector<48x64xf32>
    %1 = vector.extract_strided_slice %0 {offsets = [0, 0], sizes = [16, 64], strides = [1, 1]} : vector<48x64xf32> to vector<16x64xf32>
    %2 = vector.extract_strided_slice %0 {offsets = [16, 0], sizes = [32, 64], strides = [1, 1]} : vector<48x64xf32> to vector<32x64xf32>
    %3 = arith.truncf %0 : vector<48x64xf32> to vector<48x64xbf16>
    %c0_1 = arith.constant 0 : index
    %c0_2 = arith.constant 0 : index
    %4 = vector.load %arg2[%c0_1, %c0_2] : memref<64x256xbf16, #tpu.memory_space<vmem>>, vector<64x256xbf16>
    %cst = arith.constant dense<0.000000e+00> : vector<48x256xf32>
    %5 = tpu.matmul %3, %4, %cst {dimension_numbers = #tpu.dot_dimension_numbers<[1], [0], [0], [1], [0, 0, 1, 1], [], []>} : vector<48x64xbf16>, vector<64x256xbf16>, vector<48x256xf32> -> vector<48x256xf32>
    %c0_3 = arith.constant 0 : index
    %c0_4 = arith.constant 0 : index
    %6 = vector.load %arg3[%c0_3, %c0_4] : memref<1x256xf32, #tpu.memory_space<vmem>>, vector<1x256xf32>
    %7 = vector.broadcast %6 : vector<1x256xf32> to vector<48x256xf32>
    %8 = arith.addf %5, %7 : vector<48x256xf32>
    %9 = vector.extract_strided_slice %8 {offsets = [0, 0], sizes = [48, 128], strides = [1, 1]} : vector<48x256xf32> to vector<48x128xf32>
    %cst_5 = arith.constant 0.000000e+00 : f32
    %10 = vector.broadcast %cst_5 : f32 to vector<48x128xf32>
    %11 = arith.maximumf %9, %10 : vector<48x128xf32>
    %12 = vector.extract_strided_slice %11 {offsets = [0, 0], sizes = [48, 64], strides = [1, 1]} : vector<48x128xf32> to vector<48x64xf32>
    %13 = arith.addf %12, %0 : vector<48x64xf32>
    %14 = vector.extract_strided_slice %11 {offsets = [0, 64], sizes = [48, 64], strides = [1, 1]} : vector<48x128xf32> to vector<48x64xf32>
    %15 = arith.addf %14, %0 : vector<48x64xf32>
    %16 = vector.extract_strided_slice %8 {offsets = [16, 128], sizes = [32, 64], strides = [1, 1]} : vector<48x256xf32> to vector<32x64xf32>
    %17 = vector.extract_strided_slice %8 {offsets = [0, 192], sizes = [16, 64], strides = [1, 1]} : vector<48x256xf32> to vector<16x64xf32>
    %cst_6 = arith.constant 0.000000e+00 : f32
    %18 = vector.broadcast %cst_6 : f32 to vector<16x64xf32>
    %19 = arith.maximumf %17, %18 : vector<16x64xf32>
    %20 = arith.addf %19, %1 : vector<16x64xf32>
    %21 = arith.truncf %16 : vector<32x64xf32> to vector<32x64xbf16>
    %c0_7 = arith.constant 0 : index
    %c0_8 = arith.constant 0 : index
    %c0_9 = arith.constant 0 : index
    %22 = vector.load %arg4[%c0_7, %c0_8, %c0_9] : memref<6x64x64xbf16, #tpu.memory_space<vmem>>, vector<1x64x64xbf16>
    %23 = vector.shape_cast %22 : vector<1x64x64xbf16> to vector<64x64xbf16>
    %cst_10 = arith.constant dense<0.000000e+00> : vector<32x64xf32>
    %24 = tpu.matmul %21, %23, %cst_10 {dimension_numbers = #tpu.dot_dimension_numbers<[1], [0], [0], [1], [0, 0, 1, 1], [], []>} : vector<32x64xbf16>, vector<64x64xbf16>, vector<32x64xf32> -> vector<32x64xf32>
    %c0_11 = arith.constant 0 : index
    %c0_12 = arith.constant 0 : index
    %c0_13 = arith.constant 0 : index
    %25 = vector.load %arg5[%c0_11, %c0_12, %c0_13] : memref<6x1x64xf32, #tpu.memory_space<vmem>>, vector<1x1x64xf32>
    %26 = vector.shape_cast %25 : vector<1x1x64xf32> to vector<1x64xf32>
    %27 = vector.broadcast %26 : vector<1x64xf32> to vector<32x64xf32>
    %28 = arith.addf %24, %27 : vector<32x64xf32>
    %cst_14 = arith.constant 0.000000e+00 : f32
    %29 = vector.broadcast %cst_14 : f32 to vector<32x64xf32>
    %30 = arith.maximumf %28, %29 : vector<32x64xf32>
    %31 = arith.truncf %30 : vector<32x64xf32> to vector<32x64xbf16>
    %c1 = arith.constant 1 : index
    %c0_15 = arith.constant 0 : index
    %c0_16 = arith.constant 0 : index
    %32 = vector.load %arg4[%c1, %c0_15, %c0_16] : memref<6x64x64xbf16, #tpu.memory_space<vmem>>, vector<1x64x64xbf16>
    %33 = vector.shape_cast %32 : vector<1x64x64xbf16> to vector<64x64xbf16>
    %cst_17 = arith.constant dense<0.000000e+00> : vector<32x64xf32>
    %34 = tpu.matmul %31, %33, %cst_17 {dimension_numbers = #tpu.dot_dimension_numbers<[1], [0], [0], [1], [0, 0, 1, 1], [], []>} : vector<32x64xbf16>, vector<64x64xbf16>, vector<32x64xf32> -> vector<32x64xf32>
    %c1_18 = arith.constant 1 : index
    %c0_19 = arith.constant 0 : index
    %c0_20 = arith.constant 0 : index
    %35 = vector.load %arg5[%c1_18, %c0_19, %c0_20] : memref<6x1x64xf32, #tpu.memory_space<vmem>>, vector<1x1x64xf32>
    %36 = vector.shape_cast %35 : vector<1x1x64xf32> to vector<1x64xf32>
    %37 = vector.broadcast %36 : vector<1x64xf32> to vector<32x64xf32>
    %38 = arith.addf %34, %37 : vector<32x64xf32>
    %cst_21 = arith.constant 0.000000e+00 : f32
    %39 = vector.broadcast %cst_21 : f32 to vector<32x64xf32>
    %40 = arith.maximumf %38, %39 : vector<32x64xf32>
    %41 = arith.addf %16, %40 : vector<32x64xf32>
    %42 = arith.truncf %41 : vector<32x64xf32> to vector<32x64xbf16>
    %c2 = arith.constant 2 : index
    %c0_22 = arith.constant 0 : index
    %c0_23 = arith.constant 0 : index
    %43 = vector.load %arg4[%c2, %c0_22, %c0_23] : memref<6x64x64xbf16, #tpu.memory_space<vmem>>, vector<1x64x64xbf16>
    %44 = vector.shape_cast %43 : vector<1x64x64xbf16> to vector<64x64xbf16>
    %cst_24 = arith.constant dense<0.000000e+00> : vector<32x64xf32>
    %45 = tpu.matmul %42, %44, %cst_24 {dimension_numbers = #tpu.dot_dimension_numbers<[1], [0], [0], [1], [0, 0, 1, 1], [], []>} : vector<32x64xbf16>, vector<64x64xbf16>, vector<32x64xf32> -> vector<32x64xf32>
    %c2_25 = arith.constant 2 : index
    %c0_26 = arith.constant 0 : index
    %c0_27 = arith.constant 0 : index
    %46 = vector.load %arg5[%c2_25, %c0_26, %c0_27] : memref<6x1x64xf32, #tpu.memory_space<vmem>>, vector<1x1x64xf32>
    %47 = vector.shape_cast %46 : vector<1x1x64xf32> to vector<1x64xf32>
    %48 = vector.broadcast %47 : vector<1x64xf32> to vector<32x64xf32>
    %49 = arith.addf %45, %48 : vector<32x64xf32>
    %cst_28 = arith.constant 0.000000e+00 : f32
    %50 = vector.broadcast %cst_28 : f32 to vector<32x64xf32>
    %51 = arith.maximumf %49, %50 : vector<32x64xf32>
    %52 = arith.truncf %51 : vector<32x64xf32> to vector<32x64xbf16>
    %c3 = arith.constant 3 : index
    %c0_29 = arith.constant 0 : index
    %c0_30 = arith.constant 0 : index
    %53 = vector.load %arg4[%c3, %c0_29, %c0_30] : memref<6x64x64xbf16, #tpu.memory_space<vmem>>, vector<1x64x64xbf16>
    %54 = vector.shape_cast %53 : vector<1x64x64xbf16> to vector<64x64xbf16>
    %cst_31 = arith.constant dense<0.000000e+00> : vector<32x64xf32>
    %55 = tpu.matmul %52, %54, %cst_31 {dimension_numbers = #tpu.dot_dimension_numbers<[1], [0], [0], [1], [0, 0, 1, 1], [], []>} : vector<32x64xbf16>, vector<64x64xbf16>, vector<32x64xf32> -> vector<32x64xf32>
    %c3_32 = arith.constant 3 : index
    %c0_33 = arith.constant 0 : index
    %c0_34 = arith.constant 0 : index
    %56 = vector.load %arg5[%c3_32, %c0_33, %c0_34] : memref<6x1x64xf32, #tpu.memory_space<vmem>>, vector<1x1x64xf32>
    %57 = vector.shape_cast %56 : vector<1x1x64xf32> to vector<1x64xf32>
    %58 = vector.broadcast %57 : vector<1x64xf32> to vector<32x64xf32>
    %59 = arith.addf %55, %58 : vector<32x64xf32>
    %cst_35 = arith.constant 0.000000e+00 : f32
    %60 = vector.broadcast %cst_35 : f32 to vector<32x64xf32>
    %61 = arith.maximumf %59, %60 : vector<32x64xf32>
    %62 = arith.addf %41, %61 : vector<32x64xf32>
    %63 = arith.truncf %62 : vector<32x64xf32> to vector<32x64xbf16>
    %c4 = arith.constant 4 : index
    %c0_36 = arith.constant 0 : index
    %c0_37 = arith.constant 0 : index
    %64 = vector.load %arg4[%c4, %c0_36, %c0_37] : memref<6x64x64xbf16, #tpu.memory_space<vmem>>, vector<1x64x64xbf16>
    %65 = vector.shape_cast %64 : vector<1x64x64xbf16> to vector<64x64xbf16>
    %cst_38 = arith.constant dense<0.000000e+00> : vector<32x64xf32>
    %66 = tpu.matmul %63, %65, %cst_38 {dimension_numbers = #tpu.dot_dimension_numbers<[1], [0], [0], [1], [0, 0, 1, 1], [], []>} : vector<32x64xbf16>, vector<64x64xbf16>, vector<32x64xf32> -> vector<32x64xf32>
    %c4_39 = arith.constant 4 : index
    %c0_40 = arith.constant 0 : index
    %c0_41 = arith.constant 0 : index
    %67 = vector.load %arg5[%c4_39, %c0_40, %c0_41] : memref<6x1x64xf32, #tpu.memory_space<vmem>>, vector<1x1x64xf32>
    %68 = vector.shape_cast %67 : vector<1x1x64xf32> to vector<1x64xf32>
    %69 = vector.broadcast %68 : vector<1x64xf32> to vector<32x64xf32>
    %70 = arith.addf %66, %69 : vector<32x64xf32>
    %cst_42 = arith.constant 0.000000e+00 : f32
    %71 = vector.broadcast %cst_42 : f32 to vector<32x64xf32>
    %72 = arith.maximumf %70, %71 : vector<32x64xf32>
    %73 = arith.truncf %72 : vector<32x64xf32> to vector<32x64xbf16>
    %c5 = arith.constant 5 : index
    %c0_43 = arith.constant 0 : index
    %c0_44 = arith.constant 0 : index
    %74 = vector.load %arg4[%c5, %c0_43, %c0_44] : memref<6x64x64xbf16, #tpu.memory_space<vmem>>, vector<1x64x64xbf16>
    %75 = vector.shape_cast %74 : vector<1x64x64xbf16> to vector<64x64xbf16>
    %cst_45 = arith.constant dense<0.000000e+00> : vector<32x64xf32>
    %76 = tpu.matmul %73, %75, %cst_45 {dimension_numbers = #tpu.dot_dimension_numbers<[1], [0], [0], [1], [0, 0, 1, 1], [], []>} : vector<32x64xbf16>, vector<64x64xbf16>, vector<32x64xf32> -> vector<32x64xf32>
    %c5_46 = arith.constant 5 : index
    %c0_47 = arith.constant 0 : index
    %c0_48 = arith.constant 0 : index
    %77 = vector.load %arg5[%c5_46, %c0_47, %c0_48] : memref<6x1x64xf32, #tpu.memory_space<vmem>>, vector<1x1x64xf32>
    %78 = vector.shape_cast %77 : vector<1x1x64xf32> to vector<1x64xf32>
    %79 = vector.broadcast %78 : vector<1x64xf32> to vector<32x64xf32>
    %80 = arith.addf %76, %79 : vector<32x64xf32>
    %cst_49 = arith.constant 0.000000e+00 : f32
    %81 = vector.broadcast %cst_49 : f32 to vector<32x64xf32>
    %82 = arith.maximumf %80, %81 : vector<32x64xf32>
    %83 = arith.addf %62, %82 : vector<32x64xf32>
    %84 = arith.addf %83, %2 : vector<32x64xf32>
    %85 = arith.truncf %84 : vector<32x64xf32> to vector<32x64xbf16>
    %c0_50 = arith.constant 0 : index
    %c0_51 = arith.constant 0 : index
    %86 = vector.load %arg6[%c0_50, %c0_51] : memref<64x256xbf16, #tpu.memory_space<vmem>>, vector<64x256xbf16>
    %cst_52 = arith.constant dense<0.000000e+00> : vector<32x256xf32>
    %87 = tpu.matmul %85, %86, %cst_52 {dimension_numbers = #tpu.dot_dimension_numbers<[1], [0], [0], [1], [0, 0, 1, 1], [], []>} : vector<32x64xbf16>, vector<64x256xbf16>, vector<32x256xf32> -> vector<32x256xf32>
    %cst_53 = arith.constant dense<0xFF800000> : vector<32xf32>
    %88 = vector.multi_reduction <maximumf>, %87, %cst_53 [1] : vector<32x256xf32> to vector<32xf32>
    %89 = vector.shape_cast %88 : vector<32xf32> to vector<32x1xf32>
    %90 = vector.broadcast %89 : vector<32x1xf32> to vector<32x256xf32>
    %91 = arith.subf %87, %90 : vector<32x256xf32>
    %92 = math.exp %91 : vector<32x256xf32>
    %cst_54 = arith.constant dense<0.000000e+00> : vector<32xf32>
    %93 = vector.multi_reduction <add>, %92, %cst_54 [1] : vector<32x256xf32> to vector<32xf32>
    %94 = vector.shape_cast %93 : vector<32xf32> to vector<32x1xf32>
    %95 = math.log %94 : vector<32x1xf32>
    %96 = arith.addf %89, %95 : vector<32x1xf32>
    %97 = tpu.iota {dimensions = array<i32: 1>} : vector<16x256xi32>
    %c0_55 = arith.constant 0 : index
    %c0_56 = arith.constant 0 : index
    %98 = vector.load %arg0[%c0_55, %c0_56] : memref<16x1xi32, #tpu.memory_space<vmem>>, vector<16x1xi32>
    %99 = vector.broadcast %98 : vector<16x1xi32> to vector<16x256xi32>
    %100 = arith.cmpi eq, %97, %99 : vector<16x256xi32>
    %101 = arith.extui %100 : vector<16x256xi1> to vector<16x256xi32>
    %102 = arith.sitofp %101 : vector<16x256xi32> to vector<16x256xf32>
    %103 = arith.truncf %102 : vector<16x256xf32> to vector<16x256xbf16>
    %104 = arith.truncf %87 : vector<32x256xf32> to vector<32x256xbf16>
    %cst_57 = arith.constant dense<0.000000e+00> : vector<32x16xf32>
    %105 = tpu.matmul %104, %103, %cst_57 {dimension_numbers = #tpu.dot_dimension_numbers<[1], [1], [0], [0], [0, 0, 1, 0], [], []>} : vector<32x256xbf16>, vector<16x256xbf16>, vector<32x16xf32> -> vector<32x16xf32>
    %106 = vector.broadcast %96 : vector<32x1xf32> to vector<32x16xf32>
    %107 = arith.subf %105, %106 : vector<32x16xf32>
    %108 = tpu.concatenate %13, %15, %1 in 0 : vector<48x64xf32>, vector<48x64xf32>, vector<16x64xf32> -> vector<112x64xf32>
    %c0_58 = arith.constant 0 : index
    %c0_59 = arith.constant 0 : index
    %109 = vector.load %arg7[%c0_58, %c0_59] : memref<1x64xf32, #tpu.memory_space<vmem>>, vector<1x64xf32>
    %110 = tpu.concatenate %20, %109 in 0 : vector<16x64xf32>, vector<1x64xf32> -> vector<17x64xf32>
    %111 = arith.truncf %110 : vector<17x64xf32> to vector<17x64xbf16>
    %112 = arith.truncf %108 : vector<112x64xf32> to vector<112x64xbf16>
    %cst_60 = arith.constant dense<0.000000e+00> : vector<17x112xf32>
    %113 = tpu.matmul %111, %112, %cst_60 {dimension_numbers = #tpu.dot_dimension_numbers<[1], [1], [0], [0], [0, 0, 1, 0], [], []>} : vector<17x64xbf16>, vector<112x64xbf16>, vector<17x112xf32> -> vector<17x112xf32>
    %114 = vector.extract_strided_slice %113 {offsets = [0, 0], sizes = [16, 96], strides = [1, 1]} : vector<17x112xf32> to vector<16x96xf32>
    %115 = tpu.iota {dimensions = array<i32: 1>} : vector<16x96xi32>
    %c48_i32 = arith.constant 48 : i32
    %116 = vector.broadcast %c48_i32 : i32 to vector<16x96xi32>
    %117 = arith.cmpi sge, %115, %116 : vector<16x96xi32>
    %cst_61 = arith.constant 0xFF800000 : f32
    %118 = vector.broadcast %cst_61 : f32 to vector<16x96xf32>
    %119 = arith.select %117, %118, %114 : vector<16x96xi1>, vector<16x96xf32>
    %cst_62 = arith.constant dense<0xFF800000> : vector<16xf32>
    %120 = vector.multi_reduction <maximumf>, %119, %cst_62 [1] : vector<16x96xf32> to vector<16xf32>
    %121 = vector.shape_cast %120 : vector<16xf32> to vector<16x1xf32>
    %cst_63 = arith.constant 0xFF800000 : f32
    %122 = vector.broadcast %cst_63 : f32 to vector<16x96xf32>
    %123 = arith.select %117, %114, %122 : vector<16x96xi1>, vector<16x96xf32>
    %cst_64 = arith.constant dense<0xFF800000> : vector<16xf32>
    %124 = vector.multi_reduction <maximumf>, %123, %cst_64 [1] : vector<16x96xf32> to vector<16xf32>
    %125 = vector.shape_cast %124 : vector<16xf32> to vector<16x1xf32>
    %126 = vector.shape_cast %125 : vector<16x1xf32> to vector<16x1xf32>
    %127 = vector.broadcast %126 : vector<16x1xf32> to vector<16x96xf32>
    %128 = vector.shape_cast %121 : vector<16x1xf32> to vector<16x1xf32>
    %129 = vector.broadcast %128 : vector<16x1xf32> to vector<16x96xf32>
    %130 = arith.select %117, %127, %129 : vector<16x96xi1>, vector<16x96xf32>
    %131 = arith.subf %114, %130 : vector<16x96xf32>
    %132 = math.exp %131 : vector<16x96xf32>
    %cst_65 = arith.constant 0.000000e+00 : f32
    %133 = vector.broadcast %cst_65 : f32 to vector<16x96xf32>
    %134 = arith.select %117, %133, %132 : vector<16x96xi1>, vector<16x96xf32>
    %cst_66 = arith.constant dense<0.000000e+00> : vector<16xf32>
    %135 = vector.multi_reduction <add>, %134, %cst_66 [1] : vector<16x96xf32> to vector<16xf32>
    %136 = vector.shape_cast %135 : vector<16xf32> to vector<16x1xf32>
    %cst_67 = arith.constant 0.000000e+00 : f32
    %137 = vector.broadcast %cst_67 : f32 to vector<16x96xf32>
    %138 = arith.select %117, %132, %137 : vector<16x96xi1>, vector<16x96xf32>
    %cst_68 = arith.constant dense<0.000000e+00> : vector<16xf32>
    %139 = vector.multi_reduction <add>, %138, %cst_68 [1] : vector<16x96xf32> to vector<16xf32>
    %140 = vector.shape_cast %139 : vector<16xf32> to vector<16x1xf32>
    %cst_69 = arith.constant 1.000000e+00 : f32
    %141 = vector.broadcast %cst_69 : f32 to vector<16x1xf32>
    %142 = arith.divf %141, %140 : vector<16x1xf32>
    %cst_70 = arith.constant 1.000000e+00 : f32
    %143 = vector.broadcast %cst_70 : f32 to vector<16x1xf32>
    %144 = arith.divf %143, %136 : vector<16x1xf32>
    %145 = vector.shape_cast %142 : vector<16x1xf32> to vector<16x1xf32>
    %146 = vector.broadcast %145 : vector<16x1xf32> to vector<16x96xf32>
    %147 = vector.shape_cast %144 : vector<16x1xf32> to vector<16x1xf32>
    %148 = vector.broadcast %147 : vector<16x1xf32> to vector<16x96xf32>
    %149 = arith.select %117, %146, %148 : vector<16x96xi1>, vector<16x96xf32>
    %150 = arith.mulf %132, %149 : vector<16x96xf32>
    %151 = vector.extract_strided_slice %113 {offsets = [16, 96], sizes = [1, 16], strides = [1, 1]} : vector<17x112xf32> to vector<1x16xf32>
    %cst_71 = arith.constant dense<0xFF800000> : vector<1xf32>
    %152 = vector.multi_reduction <maximumf>, %151, %cst_71 [1] : vector<1x16xf32> to vector<1xf32>
    %cst_72 = arith.constant 0xFF800000 : f32
    %153 = vector.broadcast %cst_72 : f32 to vector<1xf32>
    %154 = arith.maximumf %153, %152 : vector<1xf32>
    %155 = vector.shape_cast %154 : vector<1xf32> to vector<1x1xf32>
    %156 = vector.broadcast %155 : vector<1x1xf32> to vector<1x16xf32>
    %157 = arith.subf %151, %156 : vector<1x16xf32>
    %158 = math.exp %157 : vector<1x16xf32>
    %cst_73 = arith.constant dense<0.000000e+00> : vector<1xf32>
    %159 = vector.multi_reduction <add>, %158, %cst_73 [1] : vector<1x16xf32> to vector<1xf32>
    %160 = vector.shape_cast %159 : vector<1xf32> to vector<1x1xf32>
    %161 = math.log %160 : vector<1x1xf32>
    %162 = vector.broadcast %161 : vector<1x1xf32> to vector<1x16xf32>
    %163 = arith.subf %157, %162 : vector<1x16xf32>
    %c0_74 = arith.constant 0 : index
    %c0_75 = arith.constant 0 : index
    %164 = vector.load %arg8[%c0_74, %c0_75] : memref<40x128xf32, #tpu.memory_space<vmem>>, vector<16x96xf32>
    tpu.vector_store %arg8[%c0_74, %c0_75], %150 {strides = array<i32>} : memref<40x128xf32, #tpu.memory_space<vmem>>, vector<16x96xf32>,
    %c0_76 = arith.constant 0 : index
    %c96 = arith.constant 96 : index
    %165 = vector.load %arg8[%c0_76, %c96] : memref<40x128xf32, #tpu.memory_space<vmem>>, vector<32x16xf32>
    tpu.vector_store %arg8[%c0_76, %c96], %107 {strides = array<i32>} : memref<40x128xf32, #tpu.memory_space<vmem>>, vector<32x16xf32>,
    %c32 = arith.constant 32 : index
    %c0_77 = arith.constant 0 : index
    %166 = vector.load %arg8[%c32, %c0_77] : memref<40x128xf32, #tpu.memory_space<vmem>>, vector<1x16xf32>
    tpu.vector_store %arg8[%c32, %c0_77], %163 {strides = array<i32>} : memref<40x128xf32, #tpu.memory_space<vmem>>, vector<1x16xf32>,
    return
  }
}

</mosaic_0001>

<bundles_post_ra>
// kernel: simple_n_pcfg_forward.1
= control target key start
LH: loop header
LB: loop body
LE: loop exit
PB: predicated region body
PF: predicated region fallthrough
CT: control target
= control target key end

     0   :  { %13 = vsyncpa [#allocation3], 0  ;;  %s2225_s0 = inlined_call_operand.vmem [shape: s32[16,1], index: 0, kind: input, shape index: {}]   ;;  %s2226_s1 = inlined_call_operand.hbm [shape: f32[48,64], index: 1, kind: input, shape index: {}]   ;;  %s2227_s2 = inlined_call_operand.hbm [shape: bf16[64,256], index: 2, kind: input, shape index: {}]   ;;  %s2228_s3 = inlined_call_operand.vmem [shape: f32[1,256], index: 3, kind: input, shape index: {}]   ;;  %s2229_s4 = inlined_call_operand.hbm [shape: bf16[6,64,64], index: 4, kind: input, shape index: {}]   ;;  %s2230_s5 = inlined_call_operand.vmem [shape: f32[6,1,64], index: 5, kind: input, shape index: {}]   ;;  %s2231_s6 = inlined_call_operand.hbm [shape: bf16[64,256], index: 6, kind: input, shape index: {}]   ;;  %s2232_s7 = inlined_call_operand.vmem [shape: f32[1,64], index: 7, kind: input, shape index: {}]   ;;  %s2233_s8 = inlined_call_operand.vmem [shape: f32[40,128], index: 8, kind: output, shape index: {}]  }
   0x1   :  { %14 = vsyncpa [#allocation5], 0 }
   0x2   :  { %15 = vsyncpa [#allocation8], 0  ;;  %s1808_s27 = smov [#allocation4]   ;;  %s1809_s29 = smov [#allocation2]  }
   0x3   :  { %s35_s28 = sshll.u32 %s1808_s27, 4  ;;  %s23_s30 = sshll.u32 %s1809_s29, 4  ;;  %s36_s28 = int_to_ptr.vmem [resolvable:$true] %s35_s28  ;;  %s1865_s30 = int_to_ptr.vmem [resolvable:$true] %s23_s30 }
   0x4   :  { %s1714_s11 = scalar_lea.hbm %s2227_s2, 1024 }
   0x5   :  { %p1715_p0 = scmp.ne.s32.totalorder %s2227_s2, %s1714_s11  ;;  %p1718_p1 = scmp.lt.u32.totalorder %s1714_s11, %s2227_s2 }
   0x7   :  { %p1720_p2 = pnand %p1718_p1, %p1715_p0 }
   0x9   :  { %1723 = shalt.err (!%p1720_p2)
}
   0xa   :  { %s1724_s16 = scalar_lea.vmem %s36_s28, 1024  ;;  %p1729_p4 = scmp.lt.s32.totalorder %s36_s28, %s36_s28 }
   0xb   :  { %p1725_p3 = scmp.ne.s32.totalorder %s36_s28, %s1724_s16  ;;  %p1730_p5 = scmp.lt.s32.totalorder %s1724_s16, %s1724_s16 }
   0xd   :  { %p1731_p6 = por %p1730_p5, %p1729_p4 }
   0xf   :  { %p1732_p7 = pnand %p1731_p6, %p1725_p3 }
  0x11   :  { %1735 = shalt.err (!%p1732_p7)
}
  0x12   :  { %s1810_s17 = smov 128   ;;  %s1811_s18 = smov 8  }
  0x13   :  { %41 = dma.hbm_to_vmem [thread:$0]  %s2227_s2, 1024, %s36_s28, [#allocation5], %s1810_s17, %s1810_s17, %s1811_s18  }
  0x14   :  { %s1736_s23 = scalar_lea.hbm %s2226_s1, 768 }
  0x15   :  { %p1737_p8 = scmp.ne.s32.totalorder %s2226_s1, %s1736_s23  ;;  %p1740_p9 = scmp.lt.u32.totalorder %s1736_s23, %s2226_s1 }
  0x17   :  { %p1742_p10 = pnand %p1740_p9, %p1737_p8 }
  0x19   :  { %1745 = shalt.err (!%p1742_p10)
}
  0x1a   :  { %s1746_s29 = scalar_lea.vmem %s1865_s30, 768  ;;  %p1751_p12 = scmp.lt.s32.totalorder %s1865_s30, %s1865_s30 }
  0x1b   :  { %p1747_p11 = scmp.ne.s32.totalorder %s1865_s30, %s1746_s29  ;;  %p1752_p13 = scmp.lt.s32.totalorder %s1746_s29, %s1746_s29 }
  0x1d   :  { %p1753_p0 = por %p1752_p13, %p1751_p12 }
  0x1f   :  { %p1754_p1 = pnand %p1753_p0, %p1747_p11 }
  0x21   :  { %1757 = shalt.err (!%p1754_p1)
}
  0x22   :  { %29 = dma.hbm_to_vmem [thread:$0]  %s2226_s1, 768, %s1865_s30, [#allocation3], %s1810_s17, %s1810_s17, %s1811_s18  }
  0x23   :  { %s1812_s9 = smov [#allocation6]   ;;  %s1758_s13 = scalar_lea.hbm %s2229_s4, 3072 }
  0x24   :  { %s49_s10 = sshll.u32 %s1812_s9, 4  ;;  %p1759_p2 = scmp.ne.s32.totalorder %s2229_s4, %s1758_s13  ;;  %s50_s10 = int_to_ptr.vmem [resolvable:$true] %s49_s10 }
  0x25   :  { %p1762_p3 = scmp.lt.u32.totalorder %s1758_s13, %s2229_s4 }
  0x27   :  { %p1764_p4 = pnand %p1762_p3, %p1759_p2 }
  0x29   :  { %1767 = shalt.err (!%p1764_p4)
}
  0x2a   :  { %s1768_s20 = scalar_lea.vmem %s50_s10, 3072  ;;  %p1773_p6 = scmp.lt.s32.totalorder %s50_s10, %s50_s10 }
  0x2b   :  { %p1769_p5 = scmp.ne.s32.totalorder %s50_s10, %s1768_s20  ;;  %p1774_p7 = scmp.lt.s32.totalorder %s1768_s20, %s1768_s20 }
  0x2d   :  { %p1775_p8 = por %p1774_p7, %p1773_p6 }
  0x2f   :  { %p1776_p9 = pnand %p1775_p8, %p1769_p5 }
  0x31   :  { %1779 = shalt.err (!%p1776_p9)
}
  0x32   :  { %s1813_s1 = smov 64   ;;  %s1814_s30 = smov 4  }
  0x33   :  { %55 = dma.hbm_to_vmem [thread:$0]  %s2229_s4, 3072, %s50_s10, [#allocation5], %s1813_s1, %s1813_s1, %s1814_s30  }
  0x34   :  { %s1815_s23 = smov [#allocation7]   ;;  %s1780_s27 = scalar_lea.hbm %s2231_s6, 1024 }
  0x35   :  { %s63_s24 = sshll.u32 %s1815_s23, 4  ;;  %p1781_p10 = scmp.ne.s32.totalorder %s2231_s6, %s1780_s27  ;;  %s64_s24 = int_to_ptr.vmem [resolvable:$true] %s63_s24 }
  0x36   :  { %p1784_p11 = scmp.lt.u32.totalorder %s1780_s27, %s2231_s6 }
  0x38   :  { %p1786_p12 = pnand %p1784_p11, %p1781_p10 }
  0x3a   :  { %1789 = shalt.err (!%p1786_p12)
}
  0x3b   :  { %s1790_s11 = scalar_lea.vmem %s64_s24, 1024  ;;  %p1795_p0 = scmp.lt.s32.totalorder %s64_s24, %s64_s24 }
  0x3c   :  { %p1791_p13 = scmp.ne.s32.totalorder %s64_s24, %s1790_s11  ;;  %p1796_p1 = scmp.lt.s32.totalorder %s1790_s11, %s1790_s11 }
  0x3e   :  { %p1797_p2 = por %p1796_p1, %p1795_p0 }
  0x40   :  { %p1798_p3 = pnand %p1797_p2, %p1791_p13 }
  0x42   :  { %1801 = shalt.err (!%p1798_p3)
}
  0x43   :  { %69 = dma.hbm_to_vmem [thread:$0]  %s2231_s6, 1024, %s64_s24, [#allocation8], %s1810_s17, %s1810_s17, %s1811_s18  }
  0x44   :  { %1802 = dma.done.wait [#allocation3], 768  }
  0x45   :  { %1803 = vsyncadd [#allocation3], 4294966528 }
  0x46   :  { %1804 = dma.done.wait [#allocation5], 4096  }
  0x47   :  { %1805 = vsyncadd [#allocation5], 4294963200 }
  0x48   :  { %1806 = dma.done.wait [#allocation8], 1024  }
  0x49   :  { %1807 = vsyncadd [#allocation8], 4294966272  ;;  %v1816_v0 = vmov 0   ;;  %v1626_v1 = vld [vmem:[#allocation4 + $0x4] ss:$8 sps:$4 sm:$0xff]   ;;  %v1934_v6 = vld [vmem:[#allocation2] sm:$0xff]  ;;  %v104_v23 = vlaneseq }
  0x4a   :  { %196 = vmatprep.mubr.bf16.mxu1 %v1816_v0  ;;  %1625 = vset.pattern.permute.xlu1 %v1816_v0  ;;  %v1628_v2 = vld [vmem:[#allocation4] ss:$8 sps:$4 sm:$0xff]   ;;  %v1629_v3 = vld [vmem:[#allocation4 + $0x14] ss:$8 sps:$4 sm:$0xff]   ;;  %v1631_v4 = vld [vmem:[#allocation4 + $0x10] ss:$8 sps:$4 sm:$0xff]  }
  0x4b   :  { %1624 = vset.pattern.permute.xlu0 %v1816_v0  ;;  %164 = vmatprep.subr.bf16.mxu1 %v1626_v1  ;;  %v1632_v5 = vld [vmem:[#allocation4 + $0x24] ss:$8 sps:$4 sm:$0xff]   ;;  %v1634_v7 = vld [vmem:[#allocation4 + $0x20] ss:$8 sps:$4 sm:$0xff]   ;;  %v1635_v9 = vld [vmem:[#allocation4 + $0x34] ss:$8 sps:$4 sm:$0xff]  }
  0x4c   :  { %165 = vmatpush1.bf16.msra.mxu1 %v1628_v2  ;;  %v1936_v8 = vld [vmem:[#allocation2 + $0x10] sm:$0xff]  ;;  %245 = vrot.lane.b32.xlu0 %v1934_v6, %s1813_s1  ;;  %v86_v10 = vld [vmem:[#allocation2 + $0x8] sm:$0xff]  ;;  %vm154_vm0 = vcmask 523264   ;;  %v1942_v11 = vld [vmem:[#allocation2 + $0x18] sm:$0xff]  ;;  %v105_v24 = vshrl.u32 %v104_v23, 7  ;;  %vm1323_vm7 = vcmask 910080  }
  0x4d   :  { %166 = vmatprep.subr.bf16.mxu1 %v1629_v3  ;;  %249 = vrot.lane.b32.xlu1 %v1936_v8, %s1813_s1  ;;  %v1637_v12 = vld [vmem:[#allocation4 + $0x30] ss:$8 sps:$4 sm:$0xff]   ;;  %v1638_v13 = vld [vmem:[#allocation6] sm:$0xff]   ;;  %v1952_v16 = vpack.c.bf16 %v86_v10, %v1934_v6  ;;  %v92_v17 = vpack.c.bf16 %v1942_v11, %v1936_v8  ;;  %v1639_v19 = vld [vmem:[#allocation6 + $0x8] sm:$0xff]   ;;  %vm1272_vm9 = vcmask 785408   ;;  %vm1334_vm10 = vcmask 122880  }
  0x4e   :  { %v1945_v14 = vld [vmem:[#allocation2 + $0x20] sm:$0xff]  ;;  %v1949_v15 = vld [vmem:[#allocation2 + $0x28] sm:$0xff]  ;;  %v106_v25 = vsub.s32 0, %v105_v24  ;;  %v110_v27 = vsub.s32 1, %v105_v24  ;;  %vm1359_vm11 = vcmask 917248  }
  0x4f   :  { %v93_v18 = vpack.c.bf16 %v1949_v15, %v1945_v14  ;;  %v1640_v20 = vld [vmem:[#allocation6 + $0x10] sm:$0xff]   ;;  %v1641_v22 = vld [vmem:[#allocation6 + $0x18] sm:$0xff]  }
  0x50   :  { %167 = vmatpush1.bf16.msra.mxu1 %v1631_v4  ;;  %247 = vrot.lane.b32.xlu0 %v86_v10, %s1813_s1  ;;  %v1452_v21 = vld [vmem:[%s2232_s7] ss:$0 sm:$0xff] }
  0x51   :  { %168 = vmatprep.subr.bf16.mxu1 %v1632_v5  ;;  %251 = vrot.lane.b32.xlu1 %v1942_v11, %s1813_s1  ;;  %v102_v26 = vld [vmem:[%s2228_s3] sm:$0x3] }
  0x52   :  { %v107_v28 = vrot.slane %v102_v26, %v106_v25  ;;  %v111_v29 = vrot.slane %v102_v26, %v110_v27 }
  0x54   :  { %169 = vmatpush1.bf16.msra.mxu1 %v1634_v7  ;;  %253 = vrot.lane.b32.xlu0 %v1945_v14, %s1813_s1 }
  0x55   :  { %170 = vmatprep.subr.bf16.mxu1 %v1635_v9  ;;  %255 = vrot.lane.b32.xlu1 %v1949_v15, %s1813_s1  ;;  %v1642_v9 = vld [vmem:[#allocation6 + $0x20] sm:$0xff]  }
  0x58   :  { %171 = vmatpush1.bf16.msra.mxu1 %v1637_v12  ;;  %1180 = vrot.lane.b32.xlu0 %v1452_v21, %s1813_s1 }
  0x59   :  { %1500 = vmatprep.subr.bf16.mxu1 %v1638_v13 }
  0x5b   :  { %1384 = vmatmul.mubr.msk.bf16.vlgmr.msra.gmra.mrb[0].mxu1 %vm154_vm0, %v1952_v16 }
  0x5c   :  { %206 = vmatprep.mubr.bf16.mxu1 %v1816_v0  ;;  %1501 = vmatpush3.bf16.msra.mxu1 %v1638_v13 }
  0x5d   :  { %1502 = vmatprep.subr.bf16.mxu1 %v1639_v19 }
  0x60   :  { %1503 = vmatpush3.bf16.msra.mxu1 %v1639_v19 }
  0x61   :  { %1504 = vmatprep.subr.bf16.mxu1 %v1640_v20 }
  0x63   :  { %1385 = vmatmul.mubr.msk.bf16.gmra.mrb[4].mxu1 %vm154_vm0, %v92_v17 }
  0x64   :  { %216 = vmatprep.mubr.bf16.mxu1 %v1816_v0  ;;  %1505 = vmatpush3.bf16.msra.mxu1 %v1640_v20 }
  0x65   :  { %1506 = vmatprep.subr.bf16.mxu1 %v1641_v22 }
  0x68   :  { %1507 = vmatpush3.bf16.msra.mxu1 %v1641_v22 }
  0x69   :  { %1512 = vmatprep.subr.bf16.mxu1 %v1642_v9 }
  0x6b   :  { %1386 = vmatmul.mubr.msk.bf16.gmra.mrb[8].mxu1 %vm154_vm0, %v93_v18 }
  0xbe   :  { %v246_v30 = vpop.permute.xlu0 %245 }
  0xbf   :  { %v250_v44 = vpop.permute.xlu1 %249 }
  0xc2   :  { %v248_v41 = vpop.permute.xlu0 %247 }
  0xc3   :  { %v252_v63 = vpop.permute.xlu1 %251 }
  0xc6   :  { %v254_v25 = vpop.permute.xlu0 %253 }
  0xc7   :  { %v256_v26 = vpop.permute.xlu1 %255 }
 0x12e   :  { %v198_v31 = vpop.f32.mrb[0].mxu1 }
 0x12f   :  { %v199_v32 = vadd.f32 %v198_v31, %v107_v28  ;;  %v200_v33 = vpop.f32.mrb[1].mxu1  ;;  %v1643_v31 = vld [vmem:[#allocation6 + $0x28] sm:$0xff]  }
 0x130   :  { %v201_v34 = vadd.f32 %v200_v33, %v111_v29  ;;  %v202_v35 = vpop.f32.mrb[2].mxu1 }
 0x131   :  { %v227_v36 = vmax.f32 %v199_v32, 0.0  ;;  %v203_v37 = vadd.f32 %v202_v35, %v107_v28  ;;  %v204_v38 = vpop.f32.mrb[3].mxu1 }
 0x132   :  { %v269_v39 = vmax.f32 %v201_v34, 0.0  ;;  %v205_v40 = vadd.f32 %v204_v38, %v111_v29  ;;  %v1644_v38 = vld [vmem:[#allocation6 + $0x30] sm:$0xff]  }
 0x133   :  { %v228_v42 = vmax.f32 %v203_v37, 0.0  ;;  %v233_v45 = vadd.f32 %v227_v36, %v1934_v6  ;;  %v263_v46 = vadd.f32 %v246_v30, %v227_v36  ;;  %v1181_v36 = vpop.permute.xlu0 %1180 }
 0x134   :  { %v270_v43 = vmax.f32 %v205_v40, 0.0  ;;  %v271_v49 = vadd.f32 %v269_v39, %v246_v30  ;;  %v1184_v37 = vpack.c.bf16 %v1181_v36, %v1181_v36  ;;  %v1645_v39 = vld [vmem:[#allocation6 + $0x38] sm:$0xff]   ;;  %v1646_v40 = vld [vmem:[#allocation6 + $0x40] sm:$0xff]  }
 0x135   :  { %v234_v47 = vadd.f32 %v228_v42, %v86_v10  ;;  %v264_v48 = vadd.f32 %v248_v41, %v228_v42  ;;  %1524 = vmatprep.subr.bf16.mxu0 %v1646_v40 }
 0x136   :  { %v272_v50 = vadd.f32 %v270_v43, %v248_v41  ;;  %v208_v51 = vpop.f32.mrb[4].mxu1  ;;  %1525 = vmatpush3.bf16.msra.mxu0 %v1646_v40  ;;  %v1387_v41 = vld [vmem:[%s2230_s5] ss:$0 sm:$0xff] }
 0x137   :  { %v1977_v52 = vpack.c.bf16 %v234_v47, %v233_v45  ;;  %v209_v53 = vadd.f32 %v208_v51, %v107_v28  ;;  %v210_v54 = vpop.f32.mrb[5].mxu1  ;;  %v1609_v55 = vpack.i.bf16 %v264_v48, %v263_v46 }
 0x138   :  { %v212_v56 = vpop.f32.mrb[6].mxu1  ;;  %v1183_v57 = vpack.c.bf16 %v272_v50, %v271_v49  ;;  %v1980_v61 = vadd.f32 %v210_v54, %v111_v29 }
 0x139   :  { %v229_v58 = vmax.f32 %v209_v53, 0.0  ;;  %v213_v59 = vadd.f32 %v212_v56, %v107_v28  ;;  %v214_v60 = vpop.f32.mrb[7].mxu1  ;;  %1610 = vrot.lane.b32.xlu1 %v1609_v55, %s1813_s1 }
 0x13a   :  { %v1982_v62 = vadd.f32 %v214_v60, %v111_v29  ;;  %v1650_v60 = vld [vmem:[#allocation6 + $0x60] sm:$0xff]  }
 0x13b   :  { %v230_v1 = vmax.f32 %v213_v59, 0.0  ;;  %v235_v3 = vadd.f32 %v229_v58, %v1936_v8  ;;  %v265_v4 = vadd.f32 %v250_v44, %v229_v58  ;;  %v1648_v58 = vld [vmem:[#allocation6 + $0x50] sm:$0xff]   ;;  %v1649_v59 = vld [vmem:[#allocation6 + $0x58] sm:$0xff]  }
 0x13c   :  { %v273_v2 = vpack.c.bf16 %v1982_v62, %v1980_v61 }
 0x13d   :  { %v236_v5 = vadd.f32 %v230_v1, %v1942_v11  ;;  %v266_v6 = vadd.f32 %v252_v63, %v230_v1  ;;  %v1651_v63 = vld [vmem:[#allocation6 + $0x68] sm:$0xff]   ;;  %v1395_v1 = vld [vmem:[%s2230_s5 + $0x1] ss:$0 sm:$0xff] }
 0x13e   :  { %v218_v7 = vpop.f32.mrb[8].mxu1  ;;  %1508 = vmatprep.mubr.msk.bf16.mxu1 %vm154_vm0, %v273_v2 }
 0x13f   :  { %v1989_v10 = vpack.c.bf16 %v236_v5, %v235_v3  ;;  %v219_v12 = vadd.f32 %v218_v7, %v107_v28  ;;  %v220_v13 = vpop.f32.mrb[9].mxu1  ;;  %v1614_v17 = vpack.i.bf16 %v266_v6, %v265_v4 }
 0x140   :  { %v222_v18 = vpop.f32.mrb[10].mxu1  ;;  %v1992_v22 = vadd.f32 %v220_v13, %v111_v29 }
 0x141   :  { %v231_v19 = vmax.f32 %v219_v12, 0.0  ;;  %v223_v20 = vadd.f32 %v222_v18, %v107_v28  ;;  %v224_v21 = vpop.f32.mrb[11].mxu1  ;;  %1615 = vrot.lane.b32.xlu0 %v1614_v17, %s1813_s1 }
 0x142   :  { %v1994_v24 = vadd.f32 %v224_v21, %v111_v29 }
 0x143   :  { %v232_v27 = vmax.f32 %v223_v20, 0.0  ;;  %v237_v32 = vadd.f32 %v231_v19, %v1945_v14  ;;  %v267_v34 = vadd.f32 %v254_v25, %v231_v19 }
 0x144   :  { %v274_v30 = vpack.c.bf16 %v1994_v24, %v1992_v22 }
 0x145   :  { %v238_v33 = vadd.f32 %v232_v27, %v1949_v15  ;;  %v268_v28 = vadd.f32 %v256_v26, %v232_v27  ;;  %1193 = vrot.lane.b32.xlu0 %v1183_v57, %s1813_s1  ;;  %v1647_v57 = vld [vmem:[#allocation6 + $0x48] sm:$0xff]  }
 0x146   :  { %1509 = vmatmul.mubr.msk.bf16.vlgmr.msra.gmra.mrb[12].mxu1 %vm154_vm0, %v274_v30  ;;  %1526 = vmatprep.subr.bf16.mxu0 %v1647_v57 }
 0x147   :  { %v2002_v35 = vpack.c.bf16 %v238_v33, %v237_v32  ;;  %v1619_v29 = vpack.i.bf16 %v268_v28, %v267_v34  ;;  %1513 = vmatpush3.bf16.msra.mxu1 %v1642_v9  ;;  %1527 = vmatpush3.bf16.msra.mxu0 %v1647_v57 }
 0x148   :  { %1514 = vmatprep.subr.bf16.mxu1 %v1643_v31  ;;  %1528 = vmatprep.subr.bf16.mxu0 %v1648_v58 }
 0x149   :  { %1620 = vrot.lane.b32.xlu1 %v1619_v29, %s1813_s1 }
 0x14b   :  { %1515 = vmatpush3.bf16.msra.mxu1 %v1643_v31  ;;  %1529 = vmatpush3.bf16.msra.mxu0 %v1648_v58 }
 0x14c   :  { %1516 = vmatprep.subr.bf16.mxu1 %v1644_v38  ;;  %1530 = vmatprep.subr.bf16.mxu0 %v1649_v59 }
 0x14d   :  { %1195 = vrot.lane.b32.xlu1 %v1184_v37, %s1813_s1 }
 0x14f   :  { %1517 = vmatpush3.bf16.msra.mxu1 %v1644_v38  ;;  %1531 = vmatpush3.bf16.msra.mxu0 %v1649_v59 }
 0x150   :  { %1518 = vmatprep.subr.bf16.mxu1 %v1645_v39 }
 0x153   :  { %1519 = vmatpush3.bf16.msra.mxu1 %v1645_v39 }
 0x154   :  { %1536 = vmatprep.subr.bf16.mxu1 %v1650_v60 }
 0x219   :  { %v1510_v42 = vpop.f32.mrb[12].mxu1 }
 0x21a   :  { %v363_v43 = vadd.f32 %v1510_v42, %v1387_v41  ;;  %v354_v44 = vpop.f32.mrb[13].mxu1 }
 0x21b   :  { %v355_v45 = vadd.f32 %v1387_v41, %v354_v44  ;;  %v1511_v46 = vpop.f32.mrb[14].mxu1  ;;  %v1655_v44 = vld [vmem:[#allocation6 + $0x88] sm:$0xff]  }
 0x21c   :  { %v366_v47 = vadd.f32 %v1511_v46, %v1387_v41  ;;  %v357_v48 = vpop.f32.mrb[15].mxu1  ;;  %v371_v50 = vmax.f32 %v363_v43, 0.0  ;;  %v1657_v46 = vld [vmem:[#allocation6 + $0x98] sm:$0xff]  }
 0x21d   :  { %v358_v49 = vadd.f32 %v1387_v41, %v357_v48  ;;  %v369_v53 = vmax.f32 %v355_v45, 0.0  ;;  %v1656_v45 = vld [vmem:[#allocation6 + $0x90] sm:$0xff]   ;;  %v1670_v48 = vld [vmem:[#allocation6 + $0xa0] sm:$0xff]  }
 0x21e   :  { %v372_v51 = vmax.f32 %v366_v47, 0.0  ;;  %v1660_v47 = vld [vmem:[#allocation7 + $0x4] ss:$8 sps:$4 sm:$0xff]  }
 0x21f   :  { %v370_v54 = vmax.f32 %v358_v49, 0.0  ;;  %v1671_v49 = vld [vmem:[#allocation6 + $0xa8] sm:$0xff]  }
 0x220   :  { %v374_v55 = vpack.c.bf16 %v372_v51, %v371_v50  ;;  %v1411_v50 = vld [vmem:[%s2230_s5 + $0x3] ss:$0 sm:$0xff] }
 0x221   :  { %v373_v56 = vpack.c.bf16 %v370_v54, %v369_v53 }
 0x223   :  { %1520 = vmatprep.mubr.msk.bf16.mxu1 %vm154_vm0, %v373_v56 }
 0x224   :  { %1521 = vmatmul.mubr.msk.bf16.vlgmr.msra.gmra.mrb[16].mxu1 %vm154_vm0, %v374_v55 }
 0x225   :  { %1537 = vmatpush3.bf16.msra.mxu1 %v1650_v60 }
 0x226   :  { %1538 = vmatprep.subr.bf16.mxu1 %v1651_v63 }
 0x229   :  { %1539 = vmatpush3.bf16.msra.mxu1 %v1651_v63 }
 0x2f7   :  { %v1522_v2 = vpop.f32.mrb[16].mxu1 }
 0x2f8   :  { %v465_v3 = vadd.f32 %v1522_v2, %v1395_v1  ;;  %v456_v4 = vpop.f32.mrb[17].mxu1 }
 0x2f9   :  { %v457_v5 = vadd.f32 %v1395_v1, %v456_v4  ;;  %v1523_v6 = vpop.f32.mrb[18].mxu1 }
 0x2fa   :  { %v468_v7 = vadd.f32 %v1523_v6, %v1395_v1  ;;  %v459_v9 = vpop.f32.mrb[19].mxu1  ;;  %v473_v17 = vmax.f32 %v465_v3, 0.0 }
 0x2fb   :  { %v471_v12 = vmax.f32 %v457_v5, 0.0  ;;  %v460_v13 = vadd.f32 %v1395_v1, %v459_v9  ;;  %v1658_v9 = vld [vmem:[#allocation7] ss:$8 sps:$4 sm:$0xff]  }
 0x2fc   :  { %v474_v18 = vmax.f32 %v468_v7, 0.0  ;;  %v2024_v26 = vadd.f32 %v473_v17, %v1992_v22  ;;  %v1403_v22 = vld [vmem:[%s2230_s5 + $0x2] ss:$0 sm:$0xff] }
 0x2fd   :  { %v472_v19 = vmax.f32 %v460_v13, 0.0  ;;  %v2018_v21 = vadd.f32 %v471_v12, %v1980_v61  ;;  %v1653_v61 = vld [vmem:[#allocation6 + $0x78] sm:$0xff]  }
 0x2fe   :  { %v2015_v20 = vadd.f32 %v474_v18, %v1994_v24  ;;  %v1652_v24 = vld [vmem:[#allocation6 + $0x70] sm:$0xff]   ;;  %v1666_v18 = vld [vmem:[#allocation7 + $0x24] ss:$8 sps:$4 sm:$0xff]  }
 0x2ff   :  { %v2021_v25 = vadd.f32 %v472_v19, %v1982_v62  ;;  %1540 = vmatprep.subr.bf16.mxu1 %v1652_v24  ;;  %v1654_v62 = vld [vmem:[#allocation6 + $0x80] sm:$0xff]   ;;  %v1663_v13 = vld [vmem:[#allocation7 + $0x14] ss:$8 sps:$4 sm:$0xff]   ;;  %v1661_v17 = vld [vmem:[#allocation7 + $0x10] ss:$8 sps:$4 sm:$0xff]  }
 0x300   :  { %v480_v30 = vpack.c.bf16 %v2015_v20, %v2024_v26  ;;  %1541 = vmatpush3.bf16.msra.mxu1 %v1652_v24  ;;  %1548 = vmatprep.subr.bf16.mxu0 %v1654_v62  ;;  %v1664_v19 = vld [vmem:[#allocation7 + $0x20] ss:$8 sps:$4 sm:$0xff]  }
 0x301   :  { %v479_v27 = vpack.c.bf16 %v2021_v25, %v2018_v21  ;;  %1542 = vmatprep.subr.bf16.mxu1 %v1653_v61 }
 0x303   :  { %1532 = vmatprep.mubr.msk.bf16.mxu0 %vm154_vm0, %v479_v27  ;;  %v1419_v27 = vld [vmem:[%s2230_s5 + $0x4] ss:$0 sm:$0xff] }
 0x304   :  { %1533 = vmatmul.mubr.msk.bf16.vlgmr.msra.gmra.mrb[0].mxu0 %vm154_vm0, %v480_v30  ;;  %1543 = vmatpush3.bf16.msra.mxu1 %v1653_v61 }
 0x305   :  { %1549 = vmatpush3.bf16.msra.mxu0 %v1654_v62  ;;  %1560 = vmatprep.subr.bf16.mxu1 %v1670_v48 }
 0x306   :  { %1550 = vmatprep.subr.bf16.mxu0 %v1655_v44 }
 0x309   :  { %1551 = vmatpush3.bf16.msra.mxu0 %v1655_v44 }
 0x30a   :  { %1552 = vmatprep.subr.bf16.mxu0 %v1656_v45 }
 0x30d   :  { %1553 = vmatpush3.bf16.msra.mxu0 %v1656_v45 }
 0x30e   :  { %1554 = vmatprep.subr.bf16.mxu0 %v1657_v46 }
 0x311   :  { %1555 = vmatpush3.bf16.msra.mxu0 %v1657_v46 }
 0x312   :  { %955 = vmatprep.subr.bf16.mxu0 %v1660_v47 }
 0x3d7   :  { %v1534_v31 = vpop.f32.mrb[0].mxu0 }
 0x3d8   :  { %v571_v32 = vadd.f32 %v1534_v31, %v1403_v22  ;;  %v562_v33 = vpop.f32.mrb[1].mxu0 }
 0x3d9   :  { %v563_v34 = vadd.f32 %v1403_v22, %v562_v33  ;;  %v1535_v28 = vpop.f32.mrb[2].mxu0 }
 0x3da   :  { %v574_v29 = vadd.f32 %v1535_v28, %v1403_v22  ;;  %v565_v36 = vpop.f32.mrb[3].mxu0  ;;  %v579_v38 = vmax.f32 %v571_v32, 0.0 }
 0x3db   :  { %v566_v37 = vadd.f32 %v1403_v22, %v565_v36  ;;  %v577_v40 = vmax.f32 %v563_v34, 0.0 }
 0x3dc   :  { %v580_v39 = vmax.f32 %v574_v29, 0.0 }
 0x3dd   :  { %v578_v41 = vmax.f32 %v566_v37, 0.0 }
 0x3de   :  { %v582_v42 = vpack.c.bf16 %v580_v39, %v579_v38  ;;  %v1071_v39 = vld [vmem:[%s2225_s0] sm:$0xff] }
 0x3df   :  { %v581_v43 = vpack.c.bf16 %v578_v41, %v577_v40  ;;  %v1072_v40 = vld [vmem:[%s2225_s0 + $0x8] sm:$0xff]  ;;  %1074 = vperm.xlu0 %1624, %v1071_v39   ;;  %v1427_v41 = vld [vmem:[%s2230_s5 + $0x5] ss:$0 sm:$0xff]  ;;  %s1818_s0 = smov 32   ;;  %s1819_s5 = smov 96  }
 0x3e0   :  { %1077 = vperm.xlu1 %1625, %v1072_v40  }
 0x3e1   :  { %1544 = vmatprep.mubr.msk.bf16.mxu1 %vm154_vm0, %v581_v43 }
 0x3e2   :  { %1545 = vmatmul.mubr.msk.bf16.vlgmr.msra.gmra.mrb[20].mxu1 %vm154_vm0, %v582_v42 }
 0x3e3   :  { %1561 = vmatpush3.bf16.msra.mxu1 %v1670_v48 }
 0x3e4   :  { %1562 = vmatprep.subr.bf16.mxu1 %v1671_v49 }
 0x3e7   :  { %1563 = vmatpush3.bf16.msra.mxu1 %v1671_v49 }
 0x4b5   :  { %v1546_v51 = vpop.f32.mrb[20].mxu1 }
 0x4b6   :  { %v673_v53 = vadd.f32 %v1546_v51, %v1411_v50  ;;  %v664_v54 = vpop.f32.mrb[21].mxu1 }
 0x4b7   :  { %v665_v55 = vadd.f32 %v1411_v50, %v664_v54  ;;  %v1547_v56 = vpop.f32.mrb[22].mxu1 }
 0x4b8   :  { %v676_v57 = vadd.f32 %v1547_v56, %v1411_v50  ;;  %v667_v58 = vpop.f32.mrb[23].mxu1  ;;  %v681_v63 = vmax.f32 %v673_v53, 0.0 }
 0x4b9   :  { %v679_v59 = vmax.f32 %v665_v55, 0.0  ;;  %v668_v60 = vadd.f32 %v1411_v50, %v667_v58 }
 0x4ba   :  { %v682_v1 = vmax.f32 %v676_v57, 0.0  ;;  %v685_v6 = vadd.f32 %v681_v63, %v2024_v26  ;;  %v1673_v26 = vld [vmem:[#allocation6 + $0xb8] sm:$0xff]  }
 0x4bb   :  { %v680_v2 = vmax.f32 %v668_v60, 0.0  ;;  %v2044_v4 = vadd.f32 %v679_v59, %v2018_v21  ;;  %v1667_v21 = vld [vmem:[#allocation7 + $0x30] ss:$8 sps:$4 sm:$0xff]  }
 0x4bc   :  { %v2041_v3 = vadd.f32 %v682_v1, %v2015_v20  ;;  %v1669_v20 = vld [vmem:[#allocation7 + $0x34] ss:$8 sps:$4 sm:$0xff]  }
 0x4bd   :  { %v2047_v5 = vadd.f32 %v680_v2, %v2021_v25  ;;  %v1672_v25 = vld [vmem:[#allocation6 + $0xb0] sm:$0xff]  }
 0x4be   :  { %v688_v12 = vpack.c.bf16 %v2041_v3, %v685_v6  ;;  %1564 = vmatprep.subr.bf16.mxu1 %v1672_v25 }
 0x4bf   :  { %v687_v7 = vpack.c.bf16 %v2047_v5, %v2044_v4  ;;  %1565 = vmatpush3.bf16.msra.mxu1 %v1672_v25  ;;  %v2104_v25 = vand.u32 127, %v104_v23 }
 0x4c0   :  { %1566 = vmatprep.subr.bf16.mxu1 %v1673_v26 }
 0x4c1   :  { %1556 = vmatprep.mubr.msk.bf16.mxu0 %vm154_vm0, %v687_v7  ;;  %vm1269_vm8 = vcmp.ge.s32.totalorder %v2104_v25, 48 }
 0x4c2   :  { %1557 = vmatmul.mubr.msk.bf16.vlgmr.msra.gmra.mrb[4].mxu0 %vm154_vm0, %v688_v12 }
 0x4c3   :  { %956 = vmatpush1.bf16.msra.mxu0 %v1658_v9  ;;  %987 = vmatprep.mubr.bf16.mxu0 %v1816_v0 }
 0x4c4   :  { %957 = vmatprep.subr.bf16.mxu0 %v1663_v13  ;;  %1567 = vmatpush3.bf16.msra.mxu1 %v1673_v26 }
 0x4c7   :  { %958 = vmatpush1.bf16.msra.mxu0 %v1661_v17 }
 0x4c8   :  { %959 = vmatprep.subr.bf16.mxu0 %v1666_v18 }
 0x4cb   :  { %960 = vmatpush1.bf16.msra.mxu0 %v1664_v19 }
 0x4cc   :  { %961 = vmatprep.subr.bf16.mxu0 %v1669_v20 }
 0x4cf   :  { %962 = vmatpush1.bf16.msra.mxu0 %v1667_v21  ;;  %v156_v21 = vsel %vm154_vm0, %v1952_v16, 0 }
 0x4d0   :  { %1590 = vmatprep.subr.msk.bf16.mxu0 %vm154_vm0, %v1977_v52 }
 0x595   :  { %v1558_v30 = vpop.f32.mrb[4].mxu0 }
 0x596   :  { %v779_v24 = vadd.f32 %v1558_v30, %v1419_v27  ;;  %v770_v61 = vpop.f32.mrb[5].mxu0 }
 0x597   :  { %v771_v62 = vadd.f32 %v1419_v27, %v770_v61  ;;  %v1559_v22 = vpop.f32.mrb[6].mxu0 }
 0x598   :  { %v782_v31 = vadd.f32 %v1559_v22, %v1419_v27  ;;  %v773_v32 = vpop.f32.mrb[7].mxu0  ;;  %v787_v34 = vmax.f32 %v779_v24, 0.0 }
 0x599   :  { %v774_v33 = vadd.f32 %v1419_v27, %v773_v32  ;;  %v785_v29 = vmax.f32 %v771_v62, 0.0  ;;  %v1070_v27 = vadd.s32 128, %v2104_v25 }
 0x59a   :  { %v788_v28 = vmax.f32 %v782_v31, 0.0 }
 0x59b   :  { %v786_v36 = vmax.f32 %v774_v33, 0.0 }
 0x59c   :  { %v790_v37 = vpack.c.bf16 %v788_v28, %v787_v34 }
 0x59d   :  { %v789_v38 = vpack.c.bf16 %v786_v36, %v785_v29 }
 0x59f   :  { %1568 = vmatprep.mubr.msk.bf16.mxu1 %vm154_vm0, %v789_v38 }
 0x5a0   :  { %1569 = vmatmul.mubr.msk.bf16.vlgmr.msra.gmra.mrb[24].mxu1 %vm154_vm0, %v790_v37 }
 0x673   :  { %v1570_v42 = vpop.f32.mrb[24].mxu1 }
 0x674   :  { %v881_v43 = vadd.f32 %v1570_v42, %v1427_v41  ;;  %v872_v44 = vpop.f32.mrb[25].mxu1 }
 0x675   :  { %v873_v45 = vadd.f32 %v1427_v41, %v872_v44  ;;  %v1571_v46 = vpop.f32.mrb[26].mxu1 }
 0x676   :  { %v889_v47 = vmax.f32 %v881_v43, 0.0  ;;  %v884_v48 = vadd.f32 %v1571_v46, %v1427_v41  ;;  %v875_v49 = vpop.f32.mrb[27].mxu1 }
 0x677   :  { %v887_v50 = vmax.f32 %v873_v45, 0.0  ;;  %v876_v51 = vadd.f32 %v1427_v41, %v875_v49 }
 0x678   :  { %v893_v53 = vadd.f32 %v889_v47, %v685_v6  ;;  %v890_v54 = vmax.f32 %v884_v48, 0.0 }
 0x679   :  { %v891_v55 = vadd.f32 %v887_v50, %v2044_v4  ;;  %v888_v56 = vmax.f32 %v876_v51, 0.0  ;;  %v1204_v4 = vsel %vm154_vm0, %v1977_v52, 0 }
 0x67a   :  { %v894_v57 = vadd.f32 %v890_v54, %v2041_v3  ;;  %v897_v59 = vadd.f32 %v893_v53, %v1945_v14  ;;  %v1616_v3 = vpop.permute.xlu0 %1615 }
 0x67b   :  { %v892_v58 = vadd.f32 %v888_v56, %v2047_v5  ;;  %v895_v63 = vadd.f32 %v891_v55, %v1936_v8  ;;  %v1207_v8 = vsel %vm154_vm0, %v1989_v10, 0  ;;  %v1210_v5 = vsel %vm154_vm0, %v2002_v35, 0 }
 0x67c   :  { %v898_v60 = vadd.f32 %v894_v57, %v1949_v15  ;;  %v1618_v6 = vunpack.i.h.bf16 %v1616_v3  ;;  %v1617_v9 = vunpack.i.l.bf16 %v1616_v3 }
 0x67d   :  { %v896_v1 = vadd.f32 %v892_v58, %v1942_v11  ;;  %v1611_v11 = vpop.permute.xlu1 %1610 }
 0x67e   :  { %v900_v2 = vpack.c.bf16 %v898_v60, %v897_v59  ;;  %v1194_v14 = vpop.permute.xlu0 %1193  ;;  %v1613_v15 = vunpack.i.h.bf16 %v1611_v11  ;;  %v1612_v52 = vunpack.i.l.bf16 %v1611_v11  ;;  %v1189_v12 = vpack.c.bf16 %v1618_v6, %v1617_v9 }
 0x67f   :  { %v899_v7 = vpack.c.bf16 %v896_v1, %v895_v63 }
 0x680   :  { %v1216_v20 = vsel %vm154_vm0, %v1189_v12, 0 }
 0x681   :  { %1442 = vmatmul.mubr.msk.bf16.vlgmr.msra.gmra.mrb[8].mxu0 %vm154_vm0, %v899_v7  ;;  %v1621_v13 = vpop.permute.xlu1 %1620 }
 0x682   :  { %1573 = vmatpush3.bf16.xpose.msra.mxu0 %v1204_v4  ;;  %997 = vmatprep.mubr.bf16.mxu0 %v1816_v0  ;;  %v1188_v0 = vpack.c.bf16 %v1613_v15, %v1612_v52  ;;  %v1623_v17 = vunpack.i.h.bf16 %v1621_v13  ;;  %v1622_v18 = vunpack.i.l.bf16 %v1621_v13  ;;  %v1075_v30 = vpop.permute.xlu0 %1074 }
 0x683   :  { %1591 = vmatprep.subr.msk.bf16.mxu0 %vm154_vm0, %v1989_v10  ;;  %vm1079_vm1 = vcmp.eq.s32.totalorder %v2104_v25, %v1075_v30  ;;  %vm1080_vm2 = vcmp.eq.s32.totalorder %v1070_v27, %v1075_v30 }
 0x684   :  { %v1213_v10 = vsel %vm154_vm0, %v1188_v0, 0  ;;  %v1190_v19 = vpack.c.bf16 %v1623_v17, %v1622_v18 }
 0x685   :  { %v1196_v26 = vpop.permute.xlu1 %1195 }
 0x689   :  { %1443 = vmatmul.mubr.msk.bf16.gmra.mrb[12].mxu0 %vm154_vm0, %v900_v2  ;;  %v1078_v24 = vpop.permute.xlu1 %1077 }
 0x68a   :  { %1575 = vmatpush3.bf16.xpose.msra.mxu0 %v1207_v8  ;;  %1586 = vmatprep.mubr.msk.bf16.mxu0 %vm154_vm0, %v1194_v14  ;;  %vm1081_vm3 = vcmp.eq.s32.totalorder %v2104_v25, %v1078_v24  ;;  %vm1082_vm4 = vcmp.eq.s32.totalorder %v1070_v27, %v1078_v24 }
 0x68b   :  { %1592 = vmatprep.subr.msk.bf16.mxu0 %vm154_vm0, %v2002_v35  ;;  %v1219_v35 = vsel %vm154_vm0, %v1190_v19, 0  ;;  %vm1448_vm5 = vmpackc.low %vm1082_vm4, %vm1080_vm2 }
 0x68c   :  { %vm1450_vm6 = vmpackc.low %vm1081_vm3, %vm1079_vm1 }
 0x692   :  { %1577 = vmatpush3.bf16.xpose.msra.mxu0 %v1210_v5 }
 0x693   :  { %1593 = vmatprep.subr.msk.bf16.mxu0 %vm154_vm0, %v1188_v0 }
 0x69a   :  { %1579 = vmatpush3.bf16.xpose.msra.mxu0 %v1213_v10 }
 0x69b   :  { %1594 = vmatprep.subr.msk.bf16.mxu0 %vm154_vm0, %v1189_v12 }
 0x6a2   :  { %1581 = vmatpush3.bf16.xpose.msra.mxu0 %v1216_v20 }
 0x6a3   :  { %1595 = vmatprep.subr.msk.bf16.mxu0 %vm154_vm0, %v1190_v19 }
 0x6aa   :  { %1583 = vmatpush3.bf16.xpose.msra.mxu0 %v1219_v35 }
 0x6ab   :  { %1596 = vmatprep.subr.msk.bf16.mxu0 %vm154_vm0, %v1952_v16  ;;  %v1817_v16 = vmov 1.0|1.0  }
 0x6ac   :  { %1449 = vmatprep.subr.msk.bf16.mxu1 %vm1448_vm5, %v1817_v16 }
 0x6ad   :  { %1451 = vmatpush1.bf16.xpose.msk.msra.mxu1 %vm1450_vm6, %v1817_v16 }
 0x6b2   :  { %1585 = vmatpush3.bf16.xpose.msra.mxu0 %v156_v21 }
 0x6b9   :  { %1587 = vmatmul.mubr.msk.bf16.vlgmr.msra.gmra.mrb[16].mxu0 %vm154_vm0, %v1196_v26 }
 0x754   :  { %v989_v23 = vpop.f32.mrb[8].mxu0 }
 0x755   :  { %v991_v61 = vpop.f32.mrb[9].mxu0 }
 0x756   :  { %v993_v62 = vpop.f32.mrb[10].mxu0  ;;  %v1008_v22 = vmax.f32 %v989_v23, %v991_v61 }
 0x757   :  { %v1093_v31 = vpack.c.bf16 %v993_v62, %v989_v23  ;;  %v995_v32 = vpop.f32.mrb[11].mxu0 }
 0x758   :  { %v1094_v33 = vpack.c.bf16 %v995_v32, %v991_v61  ;;  %1009 = vmax.xlane.f32.xlu0 %v1008_v22  ;;  %v1011_v34 = vmax.f32 %v993_v62, %v995_v32 }
 0x75a   :  { %1129 = vmatprep.mubr.bf16.mxu1 %v1094_v33 }
 0x75b   :  { %1130 = vmatmul.mubr.bf16.vlgmr.msra.gmra.mrb[28].mxu1 %v1093_v31 }
 0x75c   :  { %v2110_v28 = vpop.f32.mrb[12].mxu0  ;;  %1012 = vmax.xlane.f32.xlu0 %v1011_v34 }
 0x75d   :  { %v2112_v29 = vpop.f32.mrb[13].mxu0 }
 0x75e   :  { %v1003_v36 = vpop.f32.mrb[14].mxu0  ;;  %v1014_v37 = vmax.f32 %v2110_v28, %v2112_v29 }
 0x75f   :  { %v1095_v38 = vpack.c.bf16 %v1003_v36, %v2110_v28  ;;  %v1005_v39 = vpop.f32.mrb[15].mxu0 }
 0x760   :  { %v1096_v40 = vpack.c.bf16 %v1005_v39, %v2112_v29  ;;  %v1017_v41 = vmax.f32 %v1003_v36, %v1005_v39 }
 0x762   :  { %1018 = vmax.xlane.f32.xlu0 %v1017_v41  ;;  %1137 = vmatprep.mubr.bf16.mxu1 %v1096_v40 }
 0x763   :  { %1138 = vmatmul.mubr.bf16.gmra.mrb[32].mxu1 %v1095_v38 }
 0x78c   :  { %v1588_v42 = vpop.f32.mrb[16].mxu0 }
 0x78d   :  { %v2119_v43 = vpop.f32.mrb[17].mxu0  ;;  %v1324_v44 = vsel %vm1323_vm7, %v1588_v42, -inf }
 0x78e   :  { %1325 = vmax.xlane.f32.xlu1 %v1324_v44  ;;  %v1589_v45 = vpop.f32.mrb[18].mxu0  ;;  %v1270_v46 = vsel %vm1269_vm8, -inf, %v2119_v43  ;;  %v1279_v51 = vsel %vm1269_vm8, %v2119_v43, -inf }
 0x78f   :  { %v2124_v47 = vpop.f32.mrb[19].mxu0  ;;  %v1273_v48 = vsel %vm1272_vm9, %v1270_v46, -inf  ;;  %v1281_v53 = vsel %vm1272_vm9, %v1279_v51, -inf }
 0x790   :  { %1274 = vmax.xlane.f32.xlu0 %v1273_v48  ;;  %v1271_v49 = vsel %vm1269_vm8, -inf, %v2124_v47  ;;  %v1280_v54 = vsel %vm1269_vm8, %v2124_v47, -inf }
 0x791   :  { %v1276_v50 = vsel %vm1272_vm9, %v1271_v49, -inf  ;;  %v1284_v55 = vsel %vm1272_vm9, %v1280_v54, -inf }
 0x792   :  { %1015 = vmax.xlane.f32.xlu1 %v1014_v37 }
 0x794   :  { %1277 = vmax.xlane.f32.xlu0 %v1276_v50 }
 0x798   :  { %1282 = vmax.xlane.f32.xlu0 %v1281_v53 }
 0x79c   :  { %1285 = vmax.xlane.f32.xlu0 %v1284_v55 }
 0x7e5   :  { %v2139_v56 = vpop.xlane.xlu0 %1009 }
 0x7e6   :  { %v1020_v57 = vsub.f32 %v989_v23, %v2139_v56  ;;  %v1021_v58 = vsub.f32 %v991_v61, %v2139_v56 }
 0x7e8   :  { %v1028_v59 = vmul.f32 1.442695, %v1020_v57  ;;  %v1030_v60 = vmul.f32 1.442695, %v1021_v58 }
 0x7e9   :  { %v2143_v63 = vpop.xlane.xlu0 %1012 }
 0x7ea   :  { %1674 = vpow2.f32 %v1028_v59  ;;  %v1022_v1 = vsub.f32 %v993_v62, %v2143_v63  ;;  %v1023_v2 = vsub.f32 %v995_v32, %v2143_v63 }
 0x7eb   :  { %1676 = vpow2.f32 %v1030_v60 }
 0x7ec   :  { %v1032_v7 = vmul.f32 1.442695, %v1022_v1  ;;  %v1034_v4 = vmul.f32 1.442695, %v1023_v2 }
 0x7ee   :  { %1678 = vpow2.f32 %v1032_v7 }
 0x7ef   :  { %1680 = vpow2.f32 %v1034_v4  ;;  %v2147_v3 = vpop.xlane.xlu0 %1018 }
 0x7f0   :  { %v1026_v14 = vsub.f32 %v1003_v36, %v2147_v3  ;;  %v1027_v8 = vsub.f32 %v1005_v39, %v2147_v3 }
 0x7f2   :  { %v1040_v11 = vmul.f32 1.442695, %v1026_v14  ;;  %v1042_v15 = vmul.f32 1.442695, %v1027_v8 }
 0x7f4   :  { %v1675_v52 = vpop.eup %1674  ;;  %1682 = vpow2.f32 %v1040_v11 }
 0x7f5   :  { %v1677_v0 = vpop.eup %1676  ;;  %1684 = vpow2.f32 %v1042_v15 }
 0x7f6   :  { %v1044_v5 = vadd.f32 %v1677_v0, %v1675_v52 }
 0x7f8   :  { %v1679_v6 = vpop.eup %1678 }
 0x7f9   :  { %v1681_v9 = vpop.eup %1680 }
 0x7fa   :  { %v1047_v12 = vadd.f32 %v1681_v9, %v1679_v6 }
 0x7fc   :  { %1048 = vadd.xlane.f32.xlu0 %v1047_v12 }
 0x7fe   :  { %v1683_v10 = vpop.eup %1682 }
 0x7ff   :  { %v1685_v13 = vpop.eup %1684 }
 0x800   :  { %v1053_v17 = vadd.f32 %v1685_v13, %v1683_v10 }
 0x81b   :  { %v1326_v18 = vpop.xlane.xlu1 %1325 }
 0x81c   :  { %v2151_v19 = vsub.f32 %v1588_v42, %v1326_v18 }
 0x81d   :  { %v1275_v36 = vpop.xlane.xlu0 %1274 }
 0x81e   :  { %v1328_v20 = vmul.f32 1.442695, %v2151_v19 }
 0x81f   :  { %v2154_v35 = vpop.xlane.xlu1 %1015 }
 0x820   :  { %1686 = vpow2.f32 %v1328_v20  ;;  %v1024_v21 = vsub.f32 %v2110_v28, %v2154_v35  ;;  %v1025_v26 = vsub.f32 %v2112_v29, %v2154_v35 }
 0x821   :  { %v1278_v37 = vpop.xlane.xlu0 %1277 }
 0x822   :  { %v1036_v27 = vmul.f32 1.442695, %v1024_v21  ;;  %v1038_v30 = vmul.f32 1.442695, %v1025_v26 }
 0x824   :  { %1688 = vpow2.f32 %v1036_v27 }
 0x825   :  { %1690 = vpow2.f32 %v1038_v30  ;;  %v1283_v38 = vpop.xlane.xlu0 %1282 }
 0x826   :  { %v1287_v40 = vsel %vm1269_vm8, %v1283_v38, %v1275_v36 }
 0x827   :  { %v1289_v42 = vsub.f32 %v2119_v43, %v1287_v40 }
 0x829   :  { %v1286_v39 = vpop.xlane.xlu0 %1285  ;;  %v1291_v45 = vmul.f32 1.442695, %v1289_v42 }
 0x82a   :  { %v1687_v24 = vpop.eup %1686  ;;  %v1288_v44 = vsel %vm1269_vm8, %v1286_v39, %v1278_v37 }
 0x82b   :  { %1331 = vrot.lane.b32.xlu1 %v1687_v24, %s1818_s0  ;;  %v1290_v46 = vsub.f32 %v2124_v47, %v1288_v44 }
 0x82d   :  { %v1293_v48 = vmul.f32 1.442695, %v1290_v46 }
 0x82e   :  { %v1689_v16 = vpop.eup %1688  ;;  %v2161_v23 = vpop.f32.mrb[28].mxu1 }
 0x82f   :  { %v1691_v61 = vpop.eup %1690  ;;  %v1133_v62 = vpop.f32.mrb[29].mxu1 }
 0x830   :  { %v1134_v22 = vpop.f32.mrb[30].mxu1  ;;  %v1050_v31 = vadd.f32 %v1691_v61, %v1689_v16 }
 0x831   :  { %v1136_v32 = vpop.f32.mrb[31].mxu1 }
 0x832   :  { %1051 = vadd.xlane.f32.xlu0 %v1050_v31 }
 0x836   :  { %1054 = vadd.xlane.f32.xlu0 %v1053_v17  ;;  %v1139_v33 = vpop.f32.mrb[32].mxu1 }
 0x837   :  { %v1141_v34 = vpop.f32.mrb[33].mxu1 }
 0x838   :  { %v1142_v28 = vpop.f32.mrb[34].mxu1 }
 0x839   :  { %v1144_v29 = vpop.f32.mrb[35].mxu1 }
 0x84f   :  { %1045 = vadd.xlane.f32.xlu1 %v1044_v5 }
 0x889   :  { %v1049_v41 = vpop.xlane.xlu0 %1048 }
 0x88a   :  { %1692 = vlog2.f32 %v1049_v41 }
 0x88b   :  { %1694 = vpow2.f32 %v1291_v45 }
 0x88c   :  { %1696 = vpow2.f32 %v1293_v48 }
 0x894   :  { %v1693_v49 = vpop.eup %1692 }
 0x895   :  { %v1059_v50 = vmul.f32 0.6931472, %v1693_v49  ;;  %v1695_v43 = vpop.eup %1694 }
 0x896   :  { %v1295_v47 = vsel %vm1269_vm8, 0.0, %v1695_v43  ;;  %v1697_v57 = vpop.eup %1696 }
 0x897   :  { %v1065_v51 = vadd.f32 %v1059_v50, %v2143_v63  ;;  %v1297_v58 = vsel %vm1272_vm9, %v1295_v47, 0.0  ;;  %v1296_v59 = vsel %vm1269_vm8, 0.0, %v1697_v57  ;;  %v1303_v63 = vsel %vm1269_vm8, %v1695_v43, 0.0 }
 0x898   :  { %v1300_v60 = vsel %vm1272_vm9, %v1296_v59, 0.0  ;;  %v1305_v1 = vsel %vm1272_vm9, %v1303_v63, 0.0  ;;  %v1304_v2 = vsel %vm1269_vm8, %v1697_v57, 0.0 }
 0x899   :  { %v1147_v53 = vsub.f32 %v1134_v22, %v1065_v51  ;;  %v1308_v7 = vsel %vm1272_vm9, %v1304_v2, 0.0 }
 0x89b   :  { %1349 = vrot.lane.b32.xlu1 %v1147_v53, %s1819_s5 }
 0x89d   :  { %v1332_v54 = vpop.permute.xlu1 %1331 }
 0x89e   :  { %v1335_v55 = vsel %vm1334_vm10, %v1332_v54, 0.0 }
 0x89f   :  { %1336 = vadd.xlane.f32.xlu0 %v1335_v55 }
 0x8a3   :  { %1298 = vadd.xlane.f32.xlu0 %v1297_v58 }
 0x8a7   :  { %1301 = vadd.xlane.f32.xlu0 %v1300_v60 }
 0x8ab   :  { %1306 = vadd.xlane.f32.xlu0 %v1305_v1 }
 0x8af   :  { %1309 = vadd.xlane.f32.xlu0 %v1308_v7 }
 0x8bf   :  { %v1052_v4 = vpop.xlane.xlu0 %1051 }
 0x8c0   :  { %1698 = vlog2.f32 %v1052_v4 }
 0x8c3   :  { %v1055_v52 = vpop.xlane.xlu0 %1054 }
 0x8c4   :  { %1700 = vlog2.f32 %v1055_v52 }
 0x8ca   :  { %v1699_v14 = vpop.eup %1698 }
 0x8cb   :  { %v1061_v8 = vmul.f32 0.6931472, %v1699_v14 }
 0x8cd   :  { %v1066_v11 = vadd.f32 %v1061_v8, %v2154_v35 }
 0x8ce   :  { %v1701_v5 = vpop.eup %1700 }
 0x8cf   :  { %v1148_v15 = vsub.f32 %v1139_v33, %v1066_v11  ;;  %v1063_v9 = vmul.f32 0.6931472, %v1701_v5 }
 0x8d1   :  { %1351 = vrot.lane.b32.xlu1 %v1148_v15, %s1819_s5  ;;  %v1067_v13 = vadd.f32 %v1063_v9, %v2147_v3 }
 0x8d3   :  { %v1149_v18 = vsub.f32 %v1142_v28, %v1067_v13 }
 0x8dc   :  { %v1046_v0 = vpop.xlane.xlu1 %1045 }
 0x8dd   :  { %1702 = vlog2.f32 %v1046_v0 }
 0x8e7   :  { %v1703_v6 = vpop.eup %1702 }
 0x8e8   :  { %v1057_v12 = vmul.f32 0.6931472, %v1703_v6 }
 0x8ea   :  { %v1064_v10 = vadd.f32 %v1057_v12, %v2139_v56 }
 0x8ec   :  { %v1146_v17 = vsub.f32 %v2161_v23, %v1064_v10 }
 0x8ee   :  { %1347 = vrot.lane.b32.xlu0 %v1146_v17, %s1819_s5 }
 0x8f2   :  { %1353 = vrot.lane.b32.xlu0 %v1149_v18, %s1819_s5 }
 0x90d   :  { %v1350_v24 = vpop.permute.xlu1 %1349 }
 0x92c   :  { %v1337_v20 = vpop.xlane.xlu0 %1336 }
 0x92d   :  { %1704 = vlog2.f32 %v1337_v20 }
 0x930   :  { %v1299_v35 = vpop.xlane.xlu0 %1298 }
 0x931   :  { %1706 = vrcp.f32 %v1299_v35 }
 0x934   :  { %v1302_v21 = vpop.xlane.xlu0 %1301 }
 0x937   :  { %v1705_v26 = vpop.eup %1704 }
 0x938   :  { %v1339_v27 = vmul.f32 0.6931472, %v1705_v26  ;;  %v1307_v30 = vpop.xlane.xlu0 %1306 }
 0x939   :  { %1708 = vrcp.f32 %v1307_v30 }
 0x93a   :  { %v1340_v56 = vsub.f32 %v2151_v19, %v1339_v27  ;;  %1710 = vrcp.f32 %v1302_v21 }
 0x93b   :  { %v1707_v16 = vpop.eup %1706 }
 0x93c   :  { %1365 = vrot.lane.b32.xlu1 %v1340_v56, %s1818_s0  ;;  %v1310_v3 = vpop.xlane.xlu0 %1309 }
 0x93d   :  { %1712 = vrcp.f32 %v1310_v3 }
 0x943   :  { %v1709_v23 = vpop.eup %1708  ;;  %v1352_v61 = vpop.permute.xlu1 %1351 }
 0x944   :  { %1362 = vst.msk [vmem:[%s2233_s8 + $0x10] sm:$0xff] %vm1359_vm11, %v1352_v61  ;;  %v1319_v62 = vsel %vm1269_vm8, %v1709_v23, %v1707_v16  ;;  %v1711_v19 = vpop.eup %1710 }
 0x945   :  { %v1321_v22 = vmul.f32 %v1695_v43, %v1319_v62 }
 0x947   :  { %v1713_v31 = vpop.eup %1712  ;;  %1341 = vst.msk [vmem:[%s2233_s8] sm:$0xff] %vm1272_vm9, %v1321_v22 }
 0x948   :  { %v1320_v32 = vsel %vm1269_vm8, %v1713_v31, %v1711_v19 }
 0x949   :  { %v1322_v33 = vmul.f32 %v1697_v57, %v1320_v32 }
 0x94b   :  { %1342 = vst.msk [vmem:[%s2233_s8 + $0x8] sm:$0xff] %vm1272_vm9, %v1322_v33 }
 0x94c   :  { %1361 = vst.msk [vmem:[%s2233_s8 + $0x8] sm:$0xff] %vm1359_vm11, %v1350_v24 }
 0x960   :  { %v1348_v34 = vpop.permute.xlu0 %1347 }
 0x961   :  { %1360 = vst.msk [vmem:[%s2233_s8] sm:$0xff] %vm1359_vm11, %v1348_v34 }
 0x964   :  { %v1354_v28 = vpop.permute.xlu0 %1353 }
 0x965   :  { %1363 = vst.msk [vmem:[%s2233_s8 + $0x18] sm:$0xff] %vm1359_vm11, %v1354_v28 }
 0x9ae   :  { %v1366_v25 = vpop.permute.xlu1 %1365 }
 0x9af   :  { %1368 = vst.msk [vmem:[%s2233_s8 + $0x20] sm:$0x1] %vm1334_vm10, %v1366_v25 }
 0x9b0   :  { %1373 = vsyncpa [#allocation3], 1 }
 0x9b1   :  { %1374 = vsyncpa [#allocation5], 1 }
 0x9b2   :  { %1375 = vsyncpa [#allocation8], 1 }

</bundles_post_ra>
